<compile_context>
chip_gen: v6e
topology: v6e:2x2x1
jax: 0.10.0
libtpu: 0.0.40
codegen_flags: <defaults>
</compile_context>

<pallas_src>
import functools

import jax
import jax.numpy as jnp
from jax import lax
from jax.experimental import pallas as pl
from jax.experimental.pallas import tpu as pltpu


# ------------------------------ LSTM cell math --------------------------------
def _lstm_cell(gates, c_prev, H):
    """Gate nonlinearities.  `gates` is the (Bp, 4H) f32 pre-activation with the
    g-gate columns pre-scaled by 2, so a single full-vreg sigmoid suffices
    (tanh(z) = 2*sigmoid(2z) - 1).  Gate order matches PyTorch: [i, f, g, o]."""
    sg = jax.nn.sigmoid(gates)
    i_g = sg[:, 0 * H:1 * H]
    f_g = sg[:, 1 * H:2 * H]
    g_g = 2.0 * sg[:, 2 * H:3 * H] - 1.0
    o_g = sg[:, 3 * H:4 * H]
    c_new = f_g * c_prev + i_g * g_g
    h_new = o_g * jnp.tanh(c_new)
    return h_new, c_new


# ------------------------- fused LSTM + FC kernel ------------------------------
def fused_lstm_asr_kernel(
    x_ref,        # (T*Bp, E)    bf16 embedded input, time-major, batch-padded
    w_ih0_ref,    # (E, 4H)      bf16, g-cols * 2
    w_hh0_ref,    # (H, 4H)      bf16, g-cols * 2
    b0_ref,       # (1, 4H)      f32,  b_ih0 + b_hh0, g-cols * 2
    w_cat1_ref,   # (2H, 4H)     bf16, [W_ih1; W_hh1] stacked, g-cols * 2
    b1_ref,       # (1, 4H)      f32,  b_ih1 + b_hh1, g-cols * 2
    w_fc_ref,     # (H, O_pad)   bf16, lane-padded FC weight
    b_fc_ref,     # (1, O_pad)   f32
    out_ref,      # (T*Bp, O_pad) f32 logits (lane-dense)
    gx0_buf,      # VMEM (T, Bp, 4H) f32 : hoisted layer-0 gate inputs
    h2_buf,       # VMEM (T, Bp, H)  f32 : layer-1 hidden sequence
    *,
    T, Bp, H,
):
    f32 = jnp.float32
    bf16 = jnp.bfloat16
    w_hh0 = w_hh0_ref[...]
    w_cat1 = w_cat1_ref[...]
    b1 = b1_ref[...]

    # ---- layer 0: hoisted input projection (one MXU matmul for all steps) ----
    gx0 = jnp.dot(x_ref[...], w_ih0_ref[...], preferred_element_type=f32) + b0_ref[...]
    gx0_buf[...] = gx0.reshape(T, Bp, 4 * H)

    # ---- prologue: layer-0 time step 0 (zero initial state => no h matmul) ----
    h0, c0 = _lstm_cell(gx0_buf[0], jnp.zeros((Bp, H), f32), H)

    # ---- interleaved recurrence: super-step s = layer-0 step s + layer-1 step s-1
    def superstep(s, carry):
        h0, c0, y, cy = carry                       # all f32 (Bp, H)
        # layer-0, time s   (depends only on h0/c0 from super-step s-1)
        g0 = gx0_buf[s] + jnp.dot(h0.astype(bf16), w_hh0, preferred_element_type=f32)
        h0n, c0n = _lstm_cell(g0, c0, H)
        # layer-1, time s-1 (input = h0 produced at super-step s-1; independent
        # of the layer-0 chain above -> the two matmul/EUP chains interleave)
        lhs1 = jnp.concatenate([h0, y], axis=1).astype(bf16)    # (Bp, 2H)
        g1 = jnp.dot(lhs1, w_cat1, preferred_element_type=f32) + b1
        yn, cyn = _lstm_cell(g1, cy, H)
        h2_buf[s - 1] = yn
        return (h0n, c0n, yn, cyn)

    zeros_h = jnp.zeros((Bp, H), f32)
    h0, c0, y, cy = lax.fori_loop(1, T, superstep, (h0, c0, zeros_h, zeros_h),
                                  unroll=True)

    # ---- epilogue: layer-1 time step T-1 ----
    lhs1 = jnp.concatenate([h0, y], axis=1).astype(bf16)
    g1 = jnp.dot(lhs1, w_cat1, preferred_element_type=f32) + b1
    y_last, _ = _lstm_cell(g1, cy, H)
    h2_buf[T - 1] = y_last

    # ---- FC head: one batched matmul, one lane-dense store ----
    h2 = h2_buf[...].reshape(T * Bp, H).astype(bf16)
    out_ref[...] = jnp.dot(h2, w_fc_ref[...], preferred_element_type=f32) + b_fc_ref[...]


def run_fused_lstm_asr(x_flat, w_ih0, w_hh0, b0, w_cat1, b1, w_fc_p, b_fc_p,
                       *, T, Bp, H, O_pad):
    kernel = functools.partial(fused_lstm_asr_kernel, T=T, Bp=Bp, H=H)
    return pl.pallas_call(
        kernel,
        out_shape=jax.ShapeDtypeStruct((T * Bp, O_pad), jnp.float32),
        scratch_shapes=[
            pltpu.VMEM((T, Bp, 4 * H), jnp.float32),   # hoisted layer-0 gate inputs
            pltpu.VMEM((T, Bp, H), jnp.float32),       # layer-1 hidden sequence
        ],
    )(x_flat, w_ih0, w_hh0, b0, w_cat1, b1, w_fc_p, b_fc_p)


# ------------------------------ model wrapper ----------------------------------
def init_params(key, vocab_size=257, emb_dim=64, hidden_size=32, output_size=28):
    """PyTorch-like init (Embedding ~ N(0,1); LSTM/Linear ~ U(-k, k)).  Weights
    are stored in the transposed (in_dim, 4H) layout the kernel consumes."""
    keys = jax.random.split(key, 12)
    k = 1.0 / jnp.sqrt(hidden_size)
    u = lambda kk, shape: jax.random.uniform(kk, shape, jnp.float32, -k, k)
    return {
        "embedding": jax.random.normal(keys[0], (vocab_size, emb_dim), jnp.float32),
        # layer 0
        "w_ih0": u(keys[1], (emb_dim, 4 * hidden_size)),
        "w_hh0": u(keys[2], (hidden_size, 4 * hidden_size)),
        "b0": u(keys[3], (1, 4 * hidden_size)) + u(keys[4], (1, 4 * hidden_size)),
        # layer 1
        "w_ih1": u(keys[5], (hidden_size, 4 * hidden_size)),
        "w_hh1": u(keys[6], (hidden_size, 4 * hidden_size)),
        "b1": u(keys[7], (1, 4 * hidden_size)) + u(keys[8], (1, 4 * hidden_size)),
        # fc
        "w_fc": u(keys[9], (hidden_size, output_size)),
        "b_fc": u(keys[10], (1, output_size)),
    }


def _scale_g(w, H):
    # Pre-scale the g-gate columns by 2 so the kernel can use
    # tanh(z) = 2*sigmoid(2z) - 1 with a single sigmoid per gate vreg.
    return w.at[..., 2 * H:3 * H].multiply(2.0)


def _pack_params(params, O_pad):
    """Kernel-layout packing: g-gate pre-scale, layer-1 [W_ih; W_hh] stack,
    bf16 weight cast, lane-padded FC head.  Biases stay f32."""
    H = params["w_hh0"].shape[0]
    O = params["w_fc"].shape[1]
    bf16 = jnp.bfloat16
    w_ih0 = _scale_g(params["w_ih0"], H).astype(bf16)
    w_hh0 = _scale_g(params["w_hh0"], H).astype(bf16)
    b0 = _scale_g(params["b0"], H)
    w_cat1 = _scale_g(
        jnp.concatenate([params["w_ih1"], params["w_hh1"]], axis=0), H
    ).astype(bf16)
    b1 = _scale_g(params["b1"], H)
    w_fc = jnp.pad(params["w_fc"], ((0, 0), (0, O_pad - O))).astype(bf16)
    b_fc = jnp.pad(params["b_fc"], ((0, 0), (0, O_pad - O)))
    return (w_ih0, w_hh0, b0, w_cat1, b1, w_fc, b_fc)


def lstm_asr_forward(tokens, params):
    """tokens: (B, T) int32  ->  logits (B, T, output_size) float32."""
    B, T = tokens.shape
    H = params["w_hh0"].shape[0]
    O = params["w_fc"].shape[1]
    Bp = ((B + 7) // 8) * 8            # pad batch to a full sublane group
    O_pad = ((O + 127) // 128) * 128   # lane-dense output width

    emb = params["embedding"][tokens]               # (B, T, E) gather (plain JAX glue)
    x = jnp.transpose(emb, (1, 0, 2))               # (T, B, E) time-major
    x = jnp.pad(x, ((0, 0), (0, Bp - B), (0, 0)))   # (T, Bp, E)
    x = x.reshape(T * Bp, -1).astype(jnp.bfloat16)  # (T*Bp, E) MXU operand

    packed = _pack_params(params, O_pad)

    out = run_fused_lstm_asr(x, *packed, T=T, Bp=Bp, H=H, O_pad=O_pad)  # (T*Bp, O_pad)

    out = out.reshape(T, Bp, O_pad)[:, :B, :O]      # drop batch / lane padding
    return jnp.transpose(out, (1, 0, 2))            # batch_first (B, T, O)


if __name__ == "__main__":
    key = jax.random.PRNGKey(0)
    pkey, dkey = jax.random.split(key)

    B, T = 2, 8
    VOCAB, HIDDEN, OUT = 257, 32, 28

    params = init_params(pkey, vocab_size=VOCAB, hidden_size=HIDDEN, output_size=OUT)
    tokens = jax.random.randint(dkey, (B, T), 0, VOCAB, dtype=jnp.int32)

    logits = jax.jit(lstm_asr_forward)(tokens, params)
    jax.block_until_ready(logits)

    assert logits.shape == (B, T, OUT), logits.shape
    assert logits.dtype == jnp.float32
    assert bool(jnp.all(jnp.isfinite(logits)))
    print("KERNEL_OK")
</pallas_src>

<mosaic_0001>
module attributes {stable_mosaic.version = 11 : i64} {
  func.func @fused_lstm_asr_kernel(%arg0: memref<64x64xbf16, #tpu.memory_space<vmem>>, %arg1: memref<64x128xbf16, #tpu.memory_space<vmem>>, %arg2: memref<32x128xbf16, #tpu.memory_space<vmem>>, %arg3: memref<1x128xf32, #tpu.memory_space<vmem>>, %arg4: memref<64x128xbf16, #tpu.memory_space<vmem>>, %arg5: memref<1x128xf32, #tpu.memory_space<vmem>>, %arg6: memref<32x128xbf16, #tpu.memory_space<vmem>>, %arg7: memref<1x128xf32, #tpu.memory_space<vmem>>, %arg8: memref<64x128xf32, #tpu.memory_space<vmem>>, %arg9: memref<8x8x128xf32, #tpu.memory_space<vmem>>, %arg10: memref<8x8x32xf32, #tpu.memory_space<vmem>>) attributes {dimension_semantics = [], scalar_prefetch = 0 : i64, scratch_operands = 2 : i64, tpu.core_type = #tpu.core_type<tc>} {
    %c0 = arith.constant 0 : index
    %c0_0 = arith.constant 0 : index
    %0 = vector.load %arg2[%c0, %c0_0] : memref<32x128xbf16, #tpu.memory_space<vmem>>, vector<32x128xbf16>
    %c0_1 = arith.constant 0 : index
    %c0_2 = arith.constant 0 : index
    %1 = vector.load %arg4[%c0_1, %c0_2] : memref<64x128xbf16, #tpu.memory_space<vmem>>, vector<64x128xbf16>
    %c0_3 = arith.constant 0 : index
    %c0_4 = arith.constant 0 : index
    %2 = vector.load %arg5[%c0_3, %c0_4] : memref<1x128xf32, #tpu.memory_space<vmem>>, vector<1x128xf32>
    %c0_5 = arith.constant 0 : index
    %c0_6 = arith.constant 0 : index
    %3 = vector.load %arg0[%c0_5, %c0_6] : memref<64x64xbf16, #tpu.memory_space<vmem>>, vector<64x64xbf16>
    %c0_7 = arith.constant 0 : index
    %c0_8 = arith.constant 0 : index
    %4 = vector.load %arg1[%c0_7, %c0_8] : memref<64x128xbf16, #tpu.memory_space<vmem>>, vector<64x128xbf16>
    %cst = arith.constant dense<0.000000e+00> : vector<64x128xf32>
    %5 = tpu.matmul %3, %4, %cst {dimension_numbers = #tpu.dot_dimension_numbers<[1], [0], [0], [1], [0, 0, 1, 1], [], []>} : vector<64x64xbf16>, vector<64x128xbf16>, vector<64x128xf32> -> vector<64x128xf32>
    %c0_9 = arith.constant 0 : index
    %c0_10 = arith.constant 0 : index
    %6 = vector.load %arg3[%c0_9, %c0_10] : memref<1x128xf32, #tpu.memory_space<vmem>>, vector<1x128xf32>
    %7 = vector.broadcast %6 : vector<1x128xf32> to vector<64x128xf32>
    %8 = arith.addf %5, %7 : vector<64x128xf32>
    %9 = vector.shape_cast %8 : vector<64x128xf32> to vector<8x8x128xf32>
    %c0_11 = arith.constant 0 : index
    %c0_12 = arith.constant 0 : index
    %c0_13 = arith.constant 0 : index
    %10 = vector.load %arg9[%c0_11, %c0_12, %c0_13] : memref<8x8x128xf32, #tpu.memory_space<vmem>>, vector<8x8x128xf32>
    tpu.vector_store %arg9[%c0_11, %c0_12, %c0_13], %9 {strides = array<i32>} : memref<8x8x128xf32, #tpu.memory_space<vmem>>, vector<8x8x128xf32>,
    %c0_14 = arith.constant 0 : index
    %c0_15 = arith.constant 0 : index
    %c0_16 = arith.constant 0 : index
    %11 = vector.load %arg9[%c0_14, %c0_15, %c0_16] : memref<8x8x128xf32, #tpu.memory_space<vmem>>, vector<1x8x128xf32>
    %12 = vector.shape_cast %11 : vector<1x8x128xf32> to vector<8x128xf32>
    %cst_17 = arith.constant 0.000000e+00 : f32
    %13 = vector.broadcast %cst_17 : f32 to vector<8x32xf32>
    %14 = arith.negf %12 : vector<8x128xf32>
    %15 = math.exp %14 : vector<8x128xf32>
    %cst_18 = arith.constant 1.000000e+00 : f32
    %16 = vector.broadcast %cst_18 : f32 to vector<8x128xf32>
    %17 = arith.addf %16, %15 : vector<8x128xf32>
    %18 = arith.divf %16, %17 : vector<8x128xf32>
    %19 = vector.extract_strided_slice %18 {offsets = [0, 0], sizes = [8, 32], strides = [1, 1]} : vector<8x128xf32> to vector<8x32xf32>
    %20 = vector.extract_strided_slice %18 {offsets = [0, 32], sizes = [8, 32], strides = [1, 1]} : vector<8x128xf32> to vector<8x32xf32>
    %21 = vector.extract_strided_slice %18 {offsets = [0, 64], sizes = [8, 32], strides = [1, 1]} : vector<8x128xf32> to vector<8x32xf32>
    %cst_19 = arith.constant 2.000000e+00 : f32
    %22 = vector.broadcast %cst_19 : f32 to vector<8x32xf32>
    %23 = arith.mulf %22, %21 : vector<8x32xf32>
    %cst_20 = arith.constant 1.000000e+00 : f32
    %24 = vector.broadcast %cst_20 : f32 to vector<8x32xf32>
    %25 = arith.subf %23, %24 : vector<8x32xf32>
    %26 = vector.extract_strided_slice %18 {offsets = [0, 96], sizes = [8, 32], strides = [1, 1]} : vector<8x128xf32> to vector<8x32xf32>
    %27 = arith.mulf %20, %13 : vector<8x32xf32>
    %28 = arith.mulf %19, %25 : vector<8x32xf32>
    %29 = arith.addf %27, %28 : vector<8x32xf32>
    %30 = math.tanh %29 : vector<8x32xf32>
    %31 = arith.mulf %26, %30 : vector<8x32xf32>
    %cst_21 = arith.constant 0.000000e+00 : f32
    %32 = vector.broadcast %cst_21 : f32 to vector<8x32xf32>
    %c1_i32 = arith.constant 1 : i32
    %33 = arith.index_cast %c1_i32 : i32 to index
    %c0_22 = arith.constant 0 : index
    %c0_23 = arith.constant 0 : index
    %34 = vector.load %arg9[%33, %c0_22, %c0_23] : memref<8x8x128xf32, #tpu.memory_space<vmem>>, vector<1x8x128xf32>
    %35 = vector.shape_cast %34 : vector<1x8x128xf32> to vector<8x128xf32>
    %36 = arith.truncf %31 : vector<8x32xf32> to vector<8x32xbf16>
    %cst_24 = arith.constant dense<0.000000e+00> : vector<8x128xf32>
    %37 = tpu.matmul %36, %0, %cst_24 {dimension_numbers = #tpu.dot_dimension_numbers<[1], [0], [0], [1], [0, 0, 1, 1], [], []>} : vector<8x32xbf16>, vector<32x128xbf16>, vector<8x128xf32> -> vector<8x128xf32>
    %38 = arith.addf %35, %37 : vector<8x128xf32>
    %39 = arith.negf %38 : vector<8x128xf32>
    %40 = math.exp %39 : vector<8x128xf32>
    %cst_25 = arith.constant 1.000000e+00 : f32
    %41 = vector.broadcast %cst_25 : f32 to vector<8x128xf32>
    %42 = arith.addf %41, %40 : vector<8x128xf32>
    %43 = arith.divf %41, %42 : vector<8x128xf32>
    %44 = vector.extract_strided_slice %43 {offsets = [0, 0], sizes = [8, 32], strides = [1, 1]} : vector<8x128xf32> to vector<8x32xf32>
    %45 = vector.extract_strided_slice %43 {offsets = [0, 32], sizes = [8, 32], strides = [1, 1]} : vector<8x128xf32> to vector<8x32xf32>
    %46 = vector.extract_strided_slice %43 {offsets = [0, 64], sizes = [8, 32], strides = [1, 1]} : vector<8x128xf32> to vector<8x32xf32>
    %cst_26 = arith.constant 2.000000e+00 : f32
    %47 = vector.broadcast %cst_26 : f32 to vector<8x32xf32>
    %48 = arith.mulf %47, %46 : vector<8x32xf32>
    %cst_27 = arith.constant 1.000000e+00 : f32
    %49 = vector.broadcast %cst_27 : f32 to vector<8x32xf32>
    %50 = arith.subf %48, %49 : vector<8x32xf32>
    %51 = vector.extract_strided_slice %43 {offsets = [0, 96], sizes = [8, 32], strides = [1, 1]} : vector<8x128xf32> to vector<8x32xf32>
    %52 = arith.mulf %45, %29 : vector<8x32xf32>
    %53 = arith.mulf %44, %50 : vector<8x32xf32>
    %54 = arith.addf %52, %53 : vector<8x32xf32>
    %55 = math.tanh %54 : vector<8x32xf32>
    %56 = arith.mulf %51, %55 : vector<8x32xf32>
    %57 = tpu.concatenate %31, %32 in 1 : vector<8x32xf32>, vector<8x32xf32> -> vector<8x64xf32>
    %58 = arith.truncf %57 : vector<8x64xf32> to vector<8x64xbf16>
    %cst_28 = arith.constant dense<0.000000e+00> : vector<8x128xf32>
    %59 = tpu.matmul %58, %1, %cst_28 {dimension_numbers = #tpu.dot_dimension_numbers<[1], [0], [0], [1], [0, 0, 1, 1], [], []>} : vector<8x64xbf16>, vector<64x128xbf16>, vector<8x128xf32> -> vector<8x128xf32>
    %60 = vector.broadcast %2 : vector<1x128xf32> to vector<8x128xf32>
    %61 = arith.addf %59, %60 : vector<8x128xf32>
    %62 = arith.negf %61 : vector<8x128xf32>
    %63 = math.exp %62 : vector<8x128xf32>
    %cst_29 = arith.constant 1.000000e+00 : f32
    %64 = vector.broadcast %cst_29 : f32 to vector<8x128xf32>
    %65 = arith.addf %64, %63 : vector<8x128xf32>
    %66 = arith.divf %64, %65 : vector<8x128xf32>
    %67 = vector.extract_strided_slice %66 {offsets = [0, 0], sizes = [8, 32], strides = [1, 1]} : vector<8x128xf32> to vector<8x32xf32>
    %68 = vector.extract_strided_slice %66 {offsets = [0, 32], sizes = [8, 32], strides = [1, 1]} : vector<8x128xf32> to vector<8x32xf32>
    %69 = vector.extract_strided_slice %66 {offsets = [0, 64], sizes = [8, 32], strides = [1, 1]} : vector<8x128xf32> to vector<8x32xf32>
    %cst_30 = arith.constant 2.000000e+00 : f32
    %70 = vector.broadcast %cst_30 : f32 to vector<8x32xf32>
    %71 = arith.mulf %70, %69 : vector<8x32xf32>
    %cst_31 = arith.constant 1.000000e+00 : f32
    %72 = vector.broadcast %cst_31 : f32 to vector<8x32xf32>
    %73 = arith.subf %71, %72 : vector<8x32xf32>
    %74 = vector.extract_strided_slice %66 {offsets = [0, 96], sizes = [8, 32], strides = [1, 1]} : vector<8x128xf32> to vector<8x32xf32>
    %75 = arith.mulf %68, %32 : vector<8x32xf32>
    %76 = arith.mulf %67, %73 : vector<8x32xf32>
    %77 = arith.addf %75, %76 : vector<8x32xf32>
    %78 = math.tanh %77 : vector<8x32xf32>
    %79 = arith.mulf %74, %78 : vector<8x32xf32>
    %c1_i32_32 = arith.constant 1 : i32
    %80 = arith.subi %c1_i32, %c1_i32_32 : i32
    %81 = arith.index_cast %80 : i32 to index
    %c0_33 = arith.constant 0 : index
    %c0_34 = arith.constant 0 : index
    %82 = vector.load %arg10[%81, %c0_33, %c0_34] : memref<8x8x32xf32, #tpu.memory_space<vmem>>, vector<1x8x32xf32>
    %83 = vector.shape_cast %82 : vector<1x8x32xf32> to vector<8x32xf32>
    %84 = vector.shape_cast %79 : vector<8x32xf32> to vector<1x8x32xf32>
    tpu.vector_store %arg10[%81, %c0_33, %c0_34], %84 {strides = array<i32>} : memref<8x8x32xf32, #tpu.memory_space<vmem>>, vector<1x8x32xf32>,
    %c2_i32 = arith.constant 2 : i32
    %85 = arith.index_cast %c2_i32 : i32 to index
    %c0_35 = arith.constant 0 : index
    %c0_36 = arith.constant 0 : index
    %86 = vector.load %arg9[%85, %c0_35, %c0_36] : memref<8x8x128xf32, #tpu.memory_space<vmem>>, vector<1x8x128xf32>
    %87 = vector.shape_cast %86 : vector<1x8x128xf32> to vector<8x128xf32>
    %88 = arith.truncf %56 : vector<8x32xf32> to vector<8x32xbf16>
    %cst_37 = arith.constant dense<0.000000e+00> : vector<8x128xf32>
    %89 = tpu.matmul %88, %0, %cst_37 {dimension_numbers = #tpu.dot_dimension_numbers<[1], [0], [0], [1], [0, 0, 1, 1], [], []>} : vector<8x32xbf16>, vector<32x128xbf16>, vector<8x128xf32> -> vector<8x128xf32>
    %90 = arith.addf %87, %89 : vector<8x128xf32>
    %91 = arith.negf %90 : vector<8x128xf32>
    %92 = math.exp %91 : vector<8x128xf32>
    %cst_38 = arith.constant 1.000000e+00 : f32
    %93 = vector.broadcast %cst_38 : f32 to vector<8x128xf32>
    %94 = arith.addf %93, %92 : vector<8x128xf32>
    %95 = arith.divf %93, %94 : vector<8x128xf32>
    %96 = vector.extract_strided_slice %95 {offsets = [0, 0], sizes = [8, 32], strides = [1, 1]} : vector<8x128xf32> to vector<8x32xf32>
    %97 = vector.extract_strided_slice %95 {offsets = [0, 32], sizes = [8, 32], strides = [1, 1]} : vector<8x128xf32> to vector<8x32xf32>
    %98 = vector.extract_strided_slice %95 {offsets = [0, 64], sizes = [8, 32], strides = [1, 1]} : vector<8x128xf32> to vector<8x32xf32>
    %cst_39 = arith.constant 2.000000e+00 : f32
    %99 = vector.broadcast %cst_39 : f32 to vector<8x32xf32>
    %100 = arith.mulf %99, %98 : vector<8x32xf32>
    %cst_40 = arith.constant 1.000000e+00 : f32
    %101 = vector.broadcast %cst_40 : f32 to vector<8x32xf32>
    %102 = arith.subf %100, %101 : vector<8x32xf32>
    %103 = vector.extract_strided_slice %95 {offsets = [0, 96], sizes = [8, 32], strides = [1, 1]} : vector<8x128xf32> to vector<8x32xf32>
    %104 = arith.mulf %97, %54 : vector<8x32xf32>
    %105 = arith.mulf %96, %102 : vector<8x32xf32>
    %106 = arith.addf %104, %105 : vector<8x32xf32>
    %107 = math.tanh %106 : vector<8x32xf32>
    %108 = arith.mulf %103, %107 : vector<8x32xf32>
    %109 = tpu.concatenate %56, %79 in 1 : vector<8x32xf32>, vector<8x32xf32> -> vector<8x64xf32>
    %110 = arith.truncf %109 : vector<8x64xf32> to vector<8x64xbf16>
    %cst_41 = arith.constant dense<0.000000e+00> : vector<8x128xf32>
    %111 = tpu.matmul %110, %1, %cst_41 {dimension_numbers = #tpu.dot_dimension_numbers<[1], [0], [0], [1], [0, 0, 1, 1], [], []>} : vector<8x64xbf16>, vector<64x128xbf16>, vector<8x128xf32> -> vector<8x128xf32>
    %112 = vector.broadcast %2 : vector<1x128xf32> to vector<8x128xf32>
    %113 = arith.addf %111, %112 : vector<8x128xf32>
    %114 = arith.negf %113 : vector<8x128xf32>
    %115 = math.exp %114 : vector<8x128xf32>
    %cst_42 = arith.constant 1.000000e+00 : f32
    %116 = vector.broadcast %cst_42 : f32 to vector<8x128xf32>
    %117 = arith.addf %116, %115 : vector<8x128xf32>
    %118 = arith.divf %116, %117 : vector<8x128xf32>
    %119 = vector.extract_strided_slice %118 {offsets = [0, 0], sizes = [8, 32], strides = [1, 1]} : vector<8x128xf32> to vector<8x32xf32>
    %120 = vector.extract_strided_slice %118 {offsets = [0, 32], sizes = [8, 32], strides = [1, 1]} : vector<8x128xf32> to vector<8x32xf32>
    %121 = vector.extract_strided_slice %118 {offsets = [0, 64], sizes = [8, 32], strides = [1, 1]} : vector<8x128xf32> to vector<8x32xf32>
    %cst_43 = arith.constant 2.000000e+00 : f32
    %122 = vector.broadcast %cst_43 : f32 to vector<8x32xf32>
    %123 = arith.mulf %122, %121 : vector<8x32xf32>
    %cst_44 = arith.constant 1.000000e+00 : f32
    %124 = vector.broadcast %cst_44 : f32 to vector<8x32xf32>
    %125 = arith.subf %123, %124 : vector<8x32xf32>
    %126 = vector.extract_strided_slice %118 {offsets = [0, 96], sizes = [8, 32], strides = [1, 1]} : vector<8x128xf32> to vector<8x32xf32>
    %127 = arith.mulf %120, %77 : vector<8x32xf32>
    %128 = arith.mulf %119, %125 : vector<8x32xf32>
    %129 = arith.addf %127, %128 : vector<8x32xf32>
    %130 = math.tanh %129 : vector<8x32xf32>
    %131 = arith.mulf %126, %130 : vector<8x32xf32>
    %c1_i32_45 = arith.constant 1 : i32
    %132 = arith.subi %c2_i32, %c1_i32_45 : i32
    %133 = arith.index_cast %132 : i32 to index
    %c0_46 = arith.constant 0 : index
    %c0_47 = arith.constant 0 : index
    %134 = vector.load %arg10[%133, %c0_46, %c0_47] : memref<8x8x32xf32, #tpu.memory_space<vmem>>, vector<1x8x32xf32>
    %135 = vector.shape_cast %134 : vector<1x8x32xf32> to vector<8x32xf32>
    %136 = vector.shape_cast %131 : vector<8x32xf32> to vector<1x8x32xf32>
    tpu.vector_store %arg10[%133, %c0_46, %c0_47], %136 {strides = array<i32>} : memref<8x8x32xf32, #tpu.memory_space<vmem>>, vector<1x8x32xf32>,
    %c3_i32 = arith.constant 3 : i32
    %137 = arith.index_cast %c3_i32 : i32 to index
    %c0_48 = arith.constant 0 : index
    %c0_49 = arith.constant 0 : index
    %138 = vector.load %arg9[%137, %c0_48, %c0_49] : memref<8x8x128xf32, #tpu.memory_space<vmem>>, vector<1x8x128xf32>
    %139 = vector.shape_cast %138 : vector<1x8x128xf32> to vector<8x128xf32>
    %140 = arith.truncf %108 : vector<8x32xf32> to vector<8x32xbf16>
    %cst_50 = arith.constant dense<0.000000e+00> : vector<8x128xf32>
    %141 = tpu.matmul %140, %0, %cst_50 {dimension_numbers = #tpu.dot_dimension_numbers<[1], [0], [0], [1], [0, 0, 1, 1], [], []>} : vector<8x32xbf16>, vector<32x128xbf16>, vector<8x128xf32> -> vector<8x128xf32>
    %142 = arith.addf %139, %141 : vector<8x128xf32>
    %143 = arith.negf %142 : vector<8x128xf32>
    %144 = math.exp %143 : vector<8x128xf32>
    %cst_51 = arith.constant 1.000000e+00 : f32
    %145 = vector.broadcast %cst_51 : f32 to vector<8x128xf32>
    %146 = arith.addf %145, %144 : vector<8x128xf32>
    %147 = arith.divf %145, %146 : vector<8x128xf32>
    %148 = vector.extract_strided_slice %147 {offsets = [0, 0], sizes = [8, 32], strides = [1, 1]} : vector<8x128xf32> to vector<8x32xf32>
    %149 = vector.extract_strided_slice %147 {offsets = [0, 32], sizes = [8, 32], strides = [1, 1]} : vector<8x128xf32> to vector<8x32xf32>
    %150 = vector.extract_strided_slice %147 {offsets = [0, 64], sizes = [8, 32], strides = [1, 1]} : vector<8x128xf32> to vector<8x32xf32>
    %cst_52 = arith.constant 2.000000e+00 : f32
    %151 = vector.broadcast %cst_52 : f32 to vector<8x32xf32>
    %152 = arith.mulf %151, %150 : vector<8x32xf32>
    %cst_53 = arith.constant 1.000000e+00 : f32
    %153 = vector.broadcast %cst_53 : f32 to vector<8x32xf32>
    %154 = arith.subf %152, %153 : vector<8x32xf32>
    %155 = vector.extract_strided_slice %147 {offsets = [0, 96], sizes = [8, 32], strides = [1, 1]} : vector<8x128xf32> to vector<8x32xf32>
    %156 = arith.mulf %149, %106 : vector<8x32xf32>
    %157 = arith.mulf %148, %154 : vector<8x32xf32>
    %158 = arith.addf %156, %157 : vector<8x32xf32>
    %159 = math.tanh %158 : vector<8x32xf32>
    %160 = arith.mulf %155, %159 : vector<8x32xf32>
    %161 = tpu.concatenate %108, %131 in 1 : vector<8x32xf32>, vector<8x32xf32> -> vector<8x64xf32>
    %162 = arith.truncf %161 : vector<8x64xf32> to vector<8x64xbf16>
    %cst_54 = arith.constant dense<0.000000e+00> : vector<8x128xf32>
    %163 = tpu.matmul %162, %1, %cst_54 {dimension_numbers = #tpu.dot_dimension_numbers<[1], [0], [0], [1], [0, 0, 1, 1], [], []>} : vector<8x64xbf16>, vector<64x128xbf16>, vector<8x128xf32> -> vector<8x128xf32>
    %164 = vector.broadcast %2 : vector<1x128xf32> to vector<8x128xf32>
    %165 = arith.addf %163, %164 : vector<8x128xf32>
    %166 = arith.negf %165 : vector<8x128xf32>
    %167 = math.exp %166 : vector<8x128xf32>
    %cst_55 = arith.constant 1.000000e+00 : f32
    %168 = vector.broadcast %cst_55 : f32 to vector<8x128xf32>
    %169 = arith.addf %168, %167 : vector<8x128xf32>
    %170 = arith.divf %168, %169 : vector<8x128xf32>
    %171 = vector.extract_strided_slice %170 {offsets = [0, 0], sizes = [8, 32], strides = [1, 1]} : vector<8x128xf32> to vector<8x32xf32>
    %172 = vector.extract_strided_slice %170 {offsets = [0, 32], sizes = [8, 32], strides = [1, 1]} : vector<8x128xf32> to vector<8x32xf32>
    %173 = vector.extract_strided_slice %170 {offsets = [0, 64], sizes = [8, 32], strides = [1, 1]} : vector<8x128xf32> to vector<8x32xf32>
    %cst_56 = arith.constant 2.000000e+00 : f32
    %174 = vector.broadcast %cst_56 : f32 to vector<8x32xf32>
    %175 = arith.mulf %174, %173 : vector<8x32xf32>
    %cst_57 = arith.constant 1.000000e+00 : f32
    %176 = vector.broadcast %cst_57 : f32 to vector<8x32xf32>
    %177 = arith.subf %175, %176 : vector<8x32xf32>
    %178 = vector.extract_strided_slice %170 {offsets = [0, 96], sizes = [8, 32], strides = [1, 1]} : vector<8x128xf32> to vector<8x32xf32>
    %179 = arith.mulf %172, %129 : vector<8x32xf32>
    %180 = arith.mulf %171, %177 : vector<8x32xf32>
    %181 = arith.addf %179, %180 : vector<8x32xf32>
    %182 = math.tanh %181 : vector<8x32xf32>
    %183 = arith.mulf %178, %182 : vector<8x32xf32>
    %c1_i32_58 = arith.constant 1 : i32
    %184 = arith.subi %c3_i32, %c1_i32_58 : i32
    %185 = arith.index_cast %184 : i32 to index
    %c0_59 = arith.constant 0 : index
    %c0_60 = arith.constant 0 : index
    %186 = vector.load %arg10[%185, %c0_59, %c0_60] : memref<8x8x32xf32, #tpu.memory_space<vmem>>, vector<1x8x32xf32>
    %187 = vector.shape_cast %186 : vector<1x8x32xf32> to vector<8x32xf32>
    %188 = vector.shape_cast %183 : vector<8x32xf32> to vector<1x8x32xf32>
    tpu.vector_store %arg10[%185, %c0_59, %c0_60], %188 {strides = array<i32>} : memref<8x8x32xf32, #tpu.memory_space<vmem>>, vector<1x8x32xf32>,
    %c4_i32 = arith.constant 4 : i32
    %189 = arith.index_cast %c4_i32 : i32 to index
    %c0_61 = arith.constant 0 : index
    %c0_62 = arith.constant 0 : index
    %190 = vector.load %arg9[%189, %c0_61, %c0_62] : memref<8x8x128xf32, #tpu.memory_space<vmem>>, vector<1x8x128xf32>
    %191 = vector.shape_cast %190 : vector<1x8x128xf32> to vector<8x128xf32>
    %192 = arith.truncf %160 : vector<8x32xf32> to vector<8x32xbf16>
    %cst_63 = arith.constant dense<0.000000e+00> : vector<8x128xf32>
    %193 = tpu.matmul %192, %0, %cst_63 {dimension_numbers = #tpu.dot_dimension_numbers<[1], [0], [0], [1], [0, 0, 1, 1], [], []>} : vector<8x32xbf16>, vector<32x128xbf16>, vector<8x128xf32> -> vector<8x128xf32>
    %194 = arith.addf %191, %193 : vector<8x128xf32>
    %195 = arith.negf %194 : vector<8x128xf32>
    %196 = math.exp %195 : vector<8x128xf32>
    %cst_64 = arith.constant 1.000000e+00 : f32
    %197 = vector.broadcast %cst_64 : f32 to vector<8x128xf32>
    %198 = arith.addf %197, %196 : vector<8x128xf32>
    %199 = arith.divf %197, %198 : vector<8x128xf32>
    %200 = vector.extract_strided_slice %199 {offsets = [0, 0], sizes = [8, 32], strides = [1, 1]} : vector<8x128xf32> to vector<8x32xf32>
    %201 = vector.extract_strided_slice %199 {offsets = [0, 32], sizes = [8, 32], strides = [1, 1]} : vector<8x128xf32> to vector<8x32xf32>
    %202 = vector.extract_strided_slice %199 {offsets = [0, 64], sizes = [8, 32], strides = [1, 1]} : vector<8x128xf32> to vector<8x32xf32>
    %cst_65 = arith.constant 2.000000e+00 : f32
    %203 = vector.broadcast %cst_65 : f32 to vector<8x32xf32>
    %204 = arith.mulf %203, %202 : vector<8x32xf32>
    %cst_66 = arith.constant 1.000000e+00 : f32
    %205 = vector.broadcast %cst_66 : f32 to vector<8x32xf32>
    %206 = arith.subf %204, %205 : vector<8x32xf32>
    %207 = vector.extract_strided_slice %199 {offsets = [0, 96], sizes = [8, 32], strides = [1, 1]} : vector<8x128xf32> to vector<8x32xf32>
    %208 = arith.mulf %201, %158 : vector<8x32xf32>
    %209 = arith.mulf %200, %206 : vector<8x32xf32>
    %210 = arith.addf %208, %209 : vector<8x32xf32>
    %211 = math.tanh %210 : vector<8x32xf32>
    %212 = arith.mulf %207, %211 : vector<8x32xf32>
    %213 = tpu.concatenate %160, %183 in 1 : vector<8x32xf32>, vector<8x32xf32> -> vector<8x64xf32>
    %214 = arith.truncf %213 : vector<8x64xf32> to vector<8x64xbf16>
    %cst_67 = arith.constant dense<0.000000e+00> : vector<8x128xf32>
    %215 = tpu.matmul %214, %1, %cst_67 {dimension_numbers = #tpu.dot_dimension_numbers<[1], [0], [0], [1], [0, 0, 1, 1], [], []>} : vector<8x64xbf16>, vector<64x128xbf16>, vector<8x128xf32> -> vector<8x128xf32>
    %216 = vector.broadcast %2 : vector<1x128xf32> to vector<8x128xf32>
    %217 = arith.addf %215, %216 : vector<8x128xf32>
    %218 = arith.negf %217 : vector<8x128xf32>
    %219 = math.exp %218 : vector<8x128xf32>
    %cst_68 = arith.constant 1.000000e+00 : f32
    %220 = vector.broadcast %cst_68 : f32 to vector<8x128xf32>
    %221 = arith.addf %220, %219 : vector<8x128xf32>
    %222 = arith.divf %220, %221 : vector<8x128xf32>
    %223 = vector.extract_strided_slice %222 {offsets = [0, 0], sizes = [8, 32], strides = [1, 1]} : vector<8x128xf32> to vector<8x32xf32>
    %224 = vector.extract_strided_slice %222 {offsets = [0, 32], sizes = [8, 32], strides = [1, 1]} : vector<8x128xf32> to vector<8x32xf32>
    %225 = vector.extract_strided_slice %222 {offsets = [0, 64], sizes = [8, 32], strides = [1, 1]} : vector<8x128xf32> to vector<8x32xf32>
    %cst_69 = arith.constant 2.000000e+00 : f32
    %226 = vector.broadcast %cst_69 : f32 to vector<8x32xf32>
    %227 = arith.mulf %226, %225 : vector<8x32xf32>
    %cst_70 = arith.constant 1.000000e+00 : f32
    %228 = vector.broadcast %cst_70 : f32 to vector<8x32xf32>
    %229 = arith.subf %227, %228 : vector<8x32xf32>
    %230 = vector.extract_strided_slice %222 {offsets = [0, 96], sizes = [8, 32], strides = [1, 1]} : vector<8x128xf32> to vector<8x32xf32>
    %231 = arith.mulf %224, %181 : vector<8x32xf32>
    %232 = arith.mulf %223, %229 : vector<8x32xf32>
    %233 = arith.addf %231, %232 : vector<8x32xf32>
    %234 = math.tanh %233 : vector<8x32xf32>
    %235 = arith.mulf %230, %234 : vector<8x32xf32>
    %c1_i32_71 = arith.constant 1 : i32
    %236 = arith.subi %c4_i32, %c1_i32_71 : i32
    %237 = arith.index_cast %236 : i32 to index
    %c0_72 = arith.constant 0 : index
    %c0_73 = arith.constant 0 : index
    %238 = vector.load %arg10[%237, %c0_72, %c0_73] : memref<8x8x32xf32, #tpu.memory_space<vmem>>, vector<1x8x32xf32>
    %239 = vector.shape_cast %238 : vector<1x8x32xf32> to vector<8x32xf32>
    %240 = vector.shape_cast %235 : vector<8x32xf32> to vector<1x8x32xf32>
    tpu.vector_store %arg10[%237, %c0_72, %c0_73], %240 {strides = array<i32>} : memref<8x8x32xf32, #tpu.memory_space<vmem>>, vector<1x8x32xf32>,
    %c5_i32 = arith.constant 5 : i32
    %241 = arith.index_cast %c5_i32 : i32 to index
    %c0_74 = arith.constant 0 : index
    %c0_75 = arith.constant 0 : index
    %242 = vector.load %arg9[%241, %c0_74, %c0_75] : memref<8x8x128xf32, #tpu.memory_space<vmem>>, vector<1x8x128xf32>
    %243 = vector.shape_cast %242 : vector<1x8x128xf32> to vector<8x128xf32>
    %244 = arith.truncf %212 : vector<8x32xf32> to vector<8x32xbf16>
    %cst_76 = arith.constant dense<0.000000e+00> : vector<8x128xf32>
    %245 = tpu.matmul %244, %0, %cst_76 {dimension_numbers = #tpu.dot_dimension_numbers<[1], [0], [0], [1], [0, 0, 1, 1], [], []>} : vector<8x32xbf16>, vector<32x128xbf16>, vector<8x128xf32> -> vector<8x128xf32>
    %246 = arith.addf %243, %245 : vector<8x128xf32>
    %247 = arith.negf %246 : vector<8x128xf32>
    %248 = math.exp %247 : vector<8x128xf32>
    %cst_77 = arith.constant 1.000000e+00 : f32
    %249 = vector.broadcast %cst_77 : f32 to vector<8x128xf32>
    %250 = arith.addf %249, %248 : vector<8x128xf32>
    %251 = arith.divf %249, %250 : vector<8x128xf32>
    %252 = vector.extract_strided_slice %251 {offsets = [0, 0], sizes = [8, 32], strides = [1, 1]} : vector<8x128xf32> to vector<8x32xf32>
    %253 = vector.extract_strided_slice %251 {offsets = [0, 32], sizes = [8, 32], strides = [1, 1]} : vector<8x128xf32> to vector<8x32xf32>
    %254 = vector.extract_strided_slice %251 {offsets = [0, 64], sizes = [8, 32], strides = [1, 1]} : vector<8x128xf32> to vector<8x32xf32>
    %cst_78 = arith.constant 2.000000e+00 : f32
    %255 = vector.broadcast %cst_78 : f32 to vector<8x32xf32>
    %256 = arith.mulf %255, %254 : vector<8x32xf32>
    %cst_79 = arith.constant 1.000000e+00 : f32
    %257 = vector.broadcast %cst_79 : f32 to vector<8x32xf32>
    %258 = arith.subf %256, %257 : vector<8x32xf32>
    %259 = vector.extract_strided_slice %251 {offsets = [0, 96], sizes = [8, 32], strides = [1, 1]} : vector<8x128xf32> to vector<8x32xf32>
    %260 = arith.mulf %253, %210 : vector<8x32xf32>
    %261 = arith.mulf %252, %258 : vector<8x32xf32>
    %262 = arith.addf %260, %261 : vector<8x32xf32>
    %263 = math.tanh %262 : vector<8x32xf32>
    %264 = arith.mulf %259, %263 : vector<8x32xf32>
    %265 = tpu.concatenate %212, %235 in 1 : vector<8x32xf32>, vector<8x32xf32> -> vector<8x64xf32>
    %266 = arith.truncf %265 : vector<8x64xf32> to vector<8x64xbf16>
    %cst_80 = arith.constant dense<0.000000e+00> : vector<8x128xf32>
    %267 = tpu.matmul %266, %1, %cst_80 {dimension_numbers = #tpu.dot_dimension_numbers<[1], [0], [0], [1], [0, 0, 1, 1], [], []>} : vector<8x64xbf16>, vector<64x128xbf16>, vector<8x128xf32> -> vector<8x128xf32>
    %268 = vector.broadcast %2 : vector<1x128xf32> to vector<8x128xf32>
    %269 = arith.addf %267, %268 : vector<8x128xf32>
    %270 = arith.negf %269 : vector<8x128xf32>
    %271 = math.exp %270 : vector<8x128xf32>
    %cst_81 = arith.constant 1.000000e+00 : f32
    %272 = vector.broadcast %cst_81 : f32 to vector<8x128xf32>
    %273 = arith.addf %272, %271 : vector<8x128xf32>
    %274 = arith.divf %272, %273 : vector<8x128xf32>
    %275 = vector.extract_strided_slice %274 {offsets = [0, 0], sizes = [8, 32], strides = [1, 1]} : vector<8x128xf32> to vector<8x32xf32>
    %276 = vector.extract_strided_slice %274 {offsets = [0, 32], sizes = [8, 32], strides = [1, 1]} : vector<8x128xf32> to vector<8x32xf32>
    %277 = vector.extract_strided_slice %274 {offsets = [0, 64], sizes = [8, 32], strides = [1, 1]} : vector<8x128xf32> to vector<8x32xf32>
    %cst_82 = arith.constant 2.000000e+00 : f32
    %278 = vector.broadcast %cst_82 : f32 to vector<8x32xf32>
    %279 = arith.mulf %278, %277 : vector<8x32xf32>
    %cst_83 = arith.constant 1.000000e+00 : f32
    %280 = vector.broadcast %cst_83 : f32 to vector<8x32xf32>
    %281 = arith.subf %279, %280 : vector<8x32xf32>
    %282 = vector.extract_strided_slice %274 {offsets = [0, 96], sizes = [8, 32], strides = [1, 1]} : vector<8x128xf32> to vector<8x32xf32>
    %283 = arith.mulf %276, %233 : vector<8x32xf32>
    %284 = arith.mulf %275, %281 : vector<8x32xf32>
    %285 = arith.addf %283, %284 : vector<8x32xf32>
    %286 = math.tanh %285 : vector<8x32xf32>
    %287 = arith.mulf %282, %286 : vector<8x32xf32>
    %c1_i32_84 = arith.constant 1 : i32
    %288 = arith.subi %c5_i32, %c1_i32_84 : i32
    %289 = arith.index_cast %288 : i32 to index
    %c0_85 = arith.constant 0 : index
    %c0_86 = arith.constant 0 : index
    %290 = vector.load %arg10[%289, %c0_85, %c0_86] : memref<8x8x32xf32, #tpu.memory_space<vmem>>, vector<1x8x32xf32>
    %291 = vector.shape_cast %290 : vector<1x8x32xf32> to vector<8x32xf32>
    %292 = vector.shape_cast %287 : vector<8x32xf32> to vector<1x8x32xf32>
    tpu.vector_store %arg10[%289, %c0_85, %c0_86], %292 {strides = array<i32>} : memref<8x8x32xf32, #tpu.memory_space<vmem>>, vector<1x8x32xf32>,
    %c6_i32 = arith.constant 6 : i32
    %293 = arith.index_cast %c6_i32 : i32 to index
    %c0_87 = arith.constant 0 : index
    %c0_88 = arith.constant 0 : index
    %294 = vector.load %arg9[%293, %c0_87, %c0_88] : memref<8x8x128xf32, #tpu.memory_space<vmem>>, vector<1x8x128xf32>
    %295 = vector.shape_cast %294 : vector<1x8x128xf32> to vector<8x128xf32>
    %296 = arith.truncf %264 : vector<8x32xf32> to vector<8x32xbf16>
    %cst_89 = arith.constant dense<0.000000e+00> : vector<8x128xf32>
    %297 = tpu.matmul %296, %0, %cst_89 {dimension_numbers = #tpu.dot_dimension_numbers<[1], [0], [0], [1], [0, 0, 1, 1], [], []>} : vector<8x32xbf16>, vector<32x128xbf16>, vector<8x128xf32> -> vector<8x128xf32>
    %298 = arith.addf %295, %297 : vector<8x128xf32>
    %299 = arith.negf %298 : vector<8x128xf32>
    %300 = math.exp %299 : vector<8x128xf32>
    %cst_90 = arith.constant 1.000000e+00 : f32
    %301 = vector.broadcast %cst_90 : f32 to vector<8x128xf32>
    %302 = arith.addf %301, %300 : vector<8x128xf32>
    %303 = arith.divf %301, %302 : vector<8x128xf32>
    %304 = vector.extract_strided_slice %303 {offsets = [0, 0], sizes = [8, 32], strides = [1, 1]} : vector<8x128xf32> to vector<8x32xf32>
    %305 = vector.extract_strided_slice %303 {offsets = [0, 32], sizes = [8, 32], strides = [1, 1]} : vector<8x128xf32> to vector<8x32xf32>
    %306 = vector.extract_strided_slice %303 {offsets = [0, 64], sizes = [8, 32], strides = [1, 1]} : vector<8x128xf32> to vector<8x32xf32>
    %cst_91 = arith.constant 2.000000e+00 : f32
    %307 = vector.broadcast %cst_91 : f32 to vector<8x32xf32>
    %308 = arith.mulf %307, %306 : vector<8x32xf32>
    %cst_92 = arith.constant 1.000000e+00 : f32
    %309 = vector.broadcast %cst_92 : f32 to vector<8x32xf32>
    %310 = arith.subf %308, %309 : vector<8x32xf32>
    %311 = vector.extract_strided_slice %303 {offsets = [0, 96], sizes = [8, 32], strides = [1, 1]} : vector<8x128xf32> to vector<8x32xf32>
    %312 = arith.mulf %305, %262 : vector<8x32xf32>
    %313 = arith.mulf %304, %310 : vector<8x32xf32>
    %314 = arith.addf %312, %313 : vector<8x32xf32>
    %315 = math.tanh %314 : vector<8x32xf32>
    %316 = arith.mulf %311, %315 : vector<8x32xf32>
    %317 = tpu.concatenate %264, %287 in 1 : vector<8x32xf32>, vector<8x32xf32> -> vector<8x64xf32>
    %318 = arith.truncf %317 : vector<8x64xf32> to vector<8x64xbf16>
    %cst_93 = arith.constant dense<0.000000e+00> : vector<8x128xf32>
    %319 = tpu.matmul %318, %1, %cst_93 {dimension_numbers = #tpu.dot_dimension_numbers<[1], [0], [0], [1], [0, 0, 1, 1], [], []>} : vector<8x64xbf16>, vector<64x128xbf16>, vector<8x128xf32> -> vector<8x128xf32>
    %320 = vector.broadcast %2 : vector<1x128xf32> to vector<8x128xf32>
    %321 = arith.addf %319, %320 : vector<8x128xf32>
    %322 = arith.negf %321 : vector<8x128xf32>
    %323 = math.exp %322 : vector<8x128xf32>
    %cst_94 = arith.constant 1.000000e+00 : f32
    %324 = vector.broadcast %cst_94 : f32 to vector<8x128xf32>
    %325 = arith.addf %324, %323 : vector<8x128xf32>
    %326 = arith.divf %324, %325 : vector<8x128xf32>
    %327 = vector.extract_strided_slice %326 {offsets = [0, 0], sizes = [8, 32], strides = [1, 1]} : vector<8x128xf32> to vector<8x32xf32>
    %328 = vector.extract_strided_slice %326 {offsets = [0, 32], sizes = [8, 32], strides = [1, 1]} : vector<8x128xf32> to vector<8x32xf32>
    %329 = vector.extract_strided_slice %326 {offsets = [0, 64], sizes = [8, 32], strides = [1, 1]} : vector<8x128xf32> to vector<8x32xf32>
    %cst_95 = arith.constant 2.000000e+00 : f32
    %330 = vector.broadcast %cst_95 : f32 to vector<8x32xf32>
    %331 = arith.mulf %330, %329 : vector<8x32xf32>
    %cst_96 = arith.constant 1.000000e+00 : f32
    %332 = vector.broadcast %cst_96 : f32 to vector<8x32xf32>
    %333 = arith.subf %331, %332 : vector<8x32xf32>
    %334 = vector.extract_strided_slice %326 {offsets = [0, 96], sizes = [8, 32], strides = [1, 1]} : vector<8x128xf32> to vector<8x32xf32>
    %335 = arith.mulf %328, %285 : vector<8x32xf32>
    %336 = arith.mulf %327, %333 : vector<8x32xf32>
    %337 = arith.addf %335, %336 : vector<8x32xf32>
    %338 = math.tanh %337 : vector<8x32xf32>
    %339 = arith.mulf %334, %338 : vector<8x32xf32>
    %c1_i32_97 = arith.constant 1 : i32
    %340 = arith.subi %c6_i32, %c1_i32_97 : i32
    %341 = arith.index_cast %340 : i32 to index
    %c0_98 = arith.constant 0 : index
    %c0_99 = arith.constant 0 : index
    %342 = vector.load %arg10[%341, %c0_98, %c0_99] : memref<8x8x32xf32, #tpu.memory_space<vmem>>, vector<1x8x32xf32>
    %343 = vector.shape_cast %342 : vector<1x8x32xf32> to vector<8x32xf32>
    %344 = vector.shape_cast %339 : vector<8x32xf32> to vector<1x8x32xf32>
    tpu.vector_store %arg10[%341, %c0_98, %c0_99], %344 {strides = array<i32>} : memref<8x8x32xf32, #tpu.memory_space<vmem>>, vector<1x8x32xf32>,
    %c7_i32 = arith.constant 7 : i32
    %345 = arith.index_cast %c7_i32 : i32 to index
    %c0_100 = arith.constant 0 : index
    %c0_101 = arith.constant 0 : index
    %346 = vector.load %arg9[%345, %c0_100, %c0_101] : memref<8x8x128xf32, #tpu.memory_space<vmem>>, vector<1x8x128xf32>
    %347 = vector.shape_cast %346 : vector<1x8x128xf32> to vector<8x128xf32>
    %348 = arith.truncf %316 : vector<8x32xf32> to vector<8x32xbf16>
    %cst_102 = arith.constant dense<0.000000e+00> : vector<8x128xf32>
    %349 = tpu.matmul %348, %0, %cst_102 {dimension_numbers = #tpu.dot_dimension_numbers<[1], [0], [0], [1], [0, 0, 1, 1], [], []>} : vector<8x32xbf16>, vector<32x128xbf16>, vector<8x128xf32> -> vector<8x128xf32>
    %350 = arith.addf %347, %349 : vector<8x128xf32>
    %351 = arith.negf %350 : vector<8x128xf32>
    %352 = math.exp %351 : vector<8x128xf32>
    %cst_103 = arith.constant 1.000000e+00 : f32
    %353 = vector.broadcast %cst_103 : f32 to vector<8x128xf32>
    %354 = arith.addf %353, %352 : vector<8x128xf32>
    %355 = arith.divf %353, %354 : vector<8x128xf32>
    %356 = vector.extract_strided_slice %355 {offsets = [0, 0], sizes = [8, 32], strides = [1, 1]} : vector<8x128xf32> to vector<8x32xf32>
    %357 = vector.extract_strided_slice %355 {offsets = [0, 32], sizes = [8, 32], strides = [1, 1]} : vector<8x128xf32> to vector<8x32xf32>
    %358 = vector.extract_strided_slice %355 {offsets = [0, 64], sizes = [8, 32], strides = [1, 1]} : vector<8x128xf32> to vector<8x32xf32>
    %cst_104 = arith.constant 2.000000e+00 : f32
    %359 = vector.broadcast %cst_104 : f32 to vector<8x32xf32>
    %360 = arith.mulf %359, %358 : vector<8x32xf32>
    %cst_105 = arith.constant 1.000000e+00 : f32
    %361 = vector.broadcast %cst_105 : f32 to vector<8x32xf32>
    %362 = arith.subf %360, %361 : vector<8x32xf32>
    %363 = vector.extract_strided_slice %355 {offsets = [0, 96], sizes = [8, 32], strides = [1, 1]} : vector<8x128xf32> to vector<8x32xf32>
    %364 = arith.mulf %357, %314 : vector<8x32xf32>
    %365 = arith.mulf %356, %362 : vector<8x32xf32>
    %366 = arith.addf %364, %365 : vector<8x32xf32>
    %367 = math.tanh %366 : vector<8x32xf32>
    %368 = arith.mulf %363, %367 : vector<8x32xf32>
    %369 = tpu.concatenate %316, %339 in 1 : vector<8x32xf32>, vector<8x32xf32> -> vector<8x64xf32>
    %370 = arith.truncf %369 : vector<8x64xf32> to vector<8x64xbf16>
    %cst_106 = arith.constant dense<0.000000e+00> : vector<8x128xf32>
    %371 = tpu.matmul %370, %1, %cst_106 {dimension_numbers = #tpu.dot_dimension_numbers<[1], [0], [0], [1], [0, 0, 1, 1], [], []>} : vector<8x64xbf16>, vector<64x128xbf16>, vector<8x128xf32> -> vector<8x128xf32>
    %372 = vector.broadcast %2 : vector<1x128xf32> to vector<8x128xf32>
    %373 = arith.addf %371, %372 : vector<8x128xf32>
    %374 = arith.negf %373 : vector<8x128xf32>
    %375 = math.exp %374 : vector<8x128xf32>
    %cst_107 = arith.constant 1.000000e+00 : f32
    %376 = vector.broadcast %cst_107 : f32 to vector<8x128xf32>
    %377 = arith.addf %376, %375 : vector<8x128xf32>
    %378 = arith.divf %376, %377 : vector<8x128xf32>
    %379 = vector.extract_strided_slice %378 {offsets = [0, 0], sizes = [8, 32], strides = [1, 1]} : vector<8x128xf32> to vector<8x32xf32>
    %380 = vector.extract_strided_slice %378 {offsets = [0, 32], sizes = [8, 32], strides = [1, 1]} : vector<8x128xf32> to vector<8x32xf32>
    %381 = vector.extract_strided_slice %378 {offsets = [0, 64], sizes = [8, 32], strides = [1, 1]} : vector<8x128xf32> to vector<8x32xf32>
    %cst_108 = arith.constant 2.000000e+00 : f32
    %382 = vector.broadcast %cst_108 : f32 to vector<8x32xf32>
    %383 = arith.mulf %382, %381 : vector<8x32xf32>
    %cst_109 = arith.constant 1.000000e+00 : f32
    %384 = vector.broadcast %cst_109 : f32 to vector<8x32xf32>
    %385 = arith.subf %383, %384 : vector<8x32xf32>
    %386 = vector.extract_strided_slice %378 {offsets = [0, 96], sizes = [8, 32], strides = [1, 1]} : vector<8x128xf32> to vector<8x32xf32>
    %387 = arith.mulf %380, %337 : vector<8x32xf32>
    %388 = arith.mulf %379, %385 : vector<8x32xf32>
    %389 = arith.addf %387, %388 : vector<8x32xf32>
    %390 = math.tanh %389 : vector<8x32xf32>
    %391 = arith.mulf %386, %390 : vector<8x32xf32>
    %c1_i32_110 = arith.constant 1 : i32
    %392 = arith.subi %c7_i32, %c1_i32_110 : i32
    %393 = arith.index_cast %392 : i32 to index
    %c0_111 = arith.constant 0 : index
    %c0_112 = arith.constant 0 : index
    %394 = vector.load %arg10[%393, %c0_111, %c0_112] : memref<8x8x32xf32, #tpu.memory_space<vmem>>, vector<1x8x32xf32>
    %395 = vector.shape_cast %394 : vector<1x8x32xf32> to vector<8x32xf32>
    %396 = vector.shape_cast %391 : vector<8x32xf32> to vector<1x8x32xf32>
    tpu.vector_store %arg10[%393, %c0_111, %c0_112], %396 {strides = array<i32>} : memref<8x8x32xf32, #tpu.memory_space<vmem>>, vector<1x8x32xf32>,
    %c7_i32_113 = arith.constant 7 : i32
    %397 = tpu.concatenate %368, %391 in 1 : vector<8x32xf32>, vector<8x32xf32> -> vector<8x64xf32>
    %398 = arith.truncf %397 : vector<8x64xf32> to vector<8x64xbf16>
    %cst_114 = arith.constant dense<0.000000e+00> : vector<8x128xf32>
    %399 = tpu.matmul %398, %1, %cst_114 {dimension_numbers = #tpu.dot_dimension_numbers<[1], [0], [0], [1], [0, 0, 1, 1], [], []>} : vector<8x64xbf16>, vector<64x128xbf16>, vector<8x128xf32> -> vector<8x128xf32>
    %400 = vector.broadcast %2 : vector<1x128xf32> to vector<8x128xf32>
    %401 = arith.addf %399, %400 : vector<8x128xf32>
    %402 = arith.negf %401 : vector<8x128xf32>
    %403 = math.exp %402 : vector<8x128xf32>
    %cst_115 = arith.constant 1.000000e+00 : f32
    %404 = vector.broadcast %cst_115 : f32 to vector<8x128xf32>
    %405 = arith.addf %404, %403 : vector<8x128xf32>
    %406 = arith.divf %404, %405 : vector<8x128xf32>
    %407 = vector.extract_strided_slice %406 {offsets = [0, 0], sizes = [8, 32], strides = [1, 1]} : vector<8x128xf32> to vector<8x32xf32>
    %408 = vector.extract_strided_slice %406 {offsets = [0, 32], sizes = [8, 32], strides = [1, 1]} : vector<8x128xf32> to vector<8x32xf32>
    %409 = vector.extract_strided_slice %406 {offsets = [0, 64], sizes = [8, 32], strides = [1, 1]} : vector<8x128xf32> to vector<8x32xf32>
    %cst_116 = arith.constant 2.000000e+00 : f32
    %410 = vector.broadcast %cst_116 : f32 to vector<8x32xf32>
    %411 = arith.mulf %410, %409 : vector<8x32xf32>
    %cst_117 = arith.constant 1.000000e+00 : f32
    %412 = vector.broadcast %cst_117 : f32 to vector<8x32xf32>
    %413 = arith.subf %411, %412 : vector<8x32xf32>
    %414 = vector.extract_strided_slice %406 {offsets = [0, 96], sizes = [8, 32], strides = [1, 1]} : vector<8x128xf32> to vector<8x32xf32>
    %415 = arith.mulf %408, %389 : vector<8x32xf32>
    %416 = arith.mulf %407, %413 : vector<8x32xf32>
    %417 = arith.addf %415, %416 : vector<8x32xf32>
    %418 = math.tanh %417 : vector<8x32xf32>
    %419 = arith.mulf %414, %418 : vector<8x32xf32>
    %c7 = arith.constant 7 : index
    %c0_118 = arith.constant 0 : index
    %c0_119 = arith.constant 0 : index
    %420 = vector.load %arg10[%c7, %c0_118, %c0_119] : memref<8x8x32xf32, #tpu.memory_space<vmem>>, vector<1x8x32xf32>
    %421 = vector.shape_cast %420 : vector<1x8x32xf32> to vector<8x32xf32>
    %422 = vector.shape_cast %419 : vector<8x32xf32> to vector<1x8x32xf32>
    tpu.vector_store %arg10[%c7, %c0_118, %c0_119], %422 {strides = array<i32>} : memref<8x8x32xf32, #tpu.memory_space<vmem>>, vector<1x8x32xf32>,
    %c0_120 = arith.constant 0 : index
    %c0_121 = arith.constant 0 : index
    %c0_122 = arith.constant 0 : index
    %423 = vector.load %arg10[%c0_120, %c0_121, %c0_122] : memref<8x8x32xf32, #tpu.memory_space<vmem>>, vector<8x8x32xf32>
    %424 = vector.shape_cast %423 : vector<8x8x32xf32> to vector<64x32xf32>
    %425 = arith.truncf %424 : vector<64x32xf32> to vector<64x32xbf16>
    %c0_123 = arith.constant 0 : index
    %c0_124 = arith.constant 0 : index
    %426 = vector.load %arg6[%c0_123, %c0_124] : memref<32x128xbf16, #tpu.memory_space<vmem>>, vector<32x128xbf16>
    %cst_125 = arith.constant dense<0.000000e+00> : vector<64x128xf32>
    %427 = tpu.matmul %425, %426, %cst_125 {dimension_numbers = #tpu.dot_dimension_numbers<[1], [0], [0], [1], [0, 0, 1, 1], [], []>} : vector<64x32xbf16>, vector<32x128xbf16>, vector<64x128xf32> -> vector<64x128xf32>
    %c0_126 = arith.constant 0 : index
    %c0_127 = arith.constant 0 : index
    %428 = vector.load %arg7[%c0_126, %c0_127] : memref<1x128xf32, #tpu.memory_space<vmem>>, vector<1x128xf32>
    %429 = vector.broadcast %428 : vector<1x128xf32> to vector<64x128xf32>
    %430 = arith.addf %427, %429 : vector<64x128xf32>
    %c0_128 = arith.constant 0 : index
    %c0_129 = arith.constant 0 : index
    %431 = vector.load %arg8[%c0_128, %c0_129] : memref<64x128xf32, #tpu.memory_space<vmem>>, vector<64x128xf32>
    tpu.vector_store %arg8[%c0_128, %c0_129], %430 {strides = array<i32>} : memref<64x128xf32, #tpu.memory_space<vmem>>, vector<64x128xf32>,
    return
  }
}

</mosaic_0001>

<bundles_post_ra>
// kernel: lstm_asr_forward.1
= control target key start
LH: loop header
LB: loop body
LE: loop exit
PB: predicated region body
PF: predicated region fallthrough
CT: control target
= control target key end

     0   :  { %vm110_vm0 = vcmask 523264   ;;  %s2022_s19 = smov 32   ;;  %v2023_v21 = vmov 0.0   ;;  %vm2024_vm1 = vmmov 0   ;;  %vm240_vm2 = vcmask 261120   ;;  %s2520_s1 = inlined_call_operand.vmem [shape: bf16[64,128], index: 1, kind: input, shape index: {}]   ;;  %s2521_s0 = inlined_call_operand.vmem [shape: bf16[64,64], index: 0, kind: input, shape index: {}]   ;;  %s2522_s3 = inlined_call_operand.vmem [shape: f32[1,128], index: 3, kind: input, shape index: {}]   ;;  %s2523_s2 = inlined_call_operand.vmem [shape: bf16[32,128], index: 2, kind: input, shape index: {}]   ;;  %s2524_s4 = inlined_call_operand.vmem [shape: bf16[64,128], index: 4, kind: input, shape index: {}]   ;;  %s2525_s5 = inlined_call_operand.vmem [shape: f32[1,128], index: 5, kind: input, shape index: {}]   ;;  %s2526_s6 = inlined_call_operand.vmem [shape: bf16[32,128], index: 6, kind: input, shape index: {}]   ;;  %s2527_s7 = inlined_call_operand.vmem [shape: f32[1,128], index: 7, kind: input, shape index: {}]   ;;  %s2528_s8 = inlined_call_operand.vmem [shape: f32[64,128], index: 8, kind: output, shape index: {}]  }
   0x1   :  { %v1907_v0 = vld [vmem:[%s2520_s1 + $0x18] sm:$0xff]   ;;  %v1908_v1 = vld [vmem:[%s2520_s1 + $0x10] sm:$0xff]   ;;  %v1909_v2 = vld [vmem:[%s2520_s1 + $0x8] sm:$0xff]   ;;  %1739 = vmatprep.subr.bf16.mxu1 %v2023_v21  ;;  %1743 = vmatprep.mubr.msk.bf16.mxu1 %vm2024_vm1, %v2023_v21 }
   0x2   :  { %1723 = vmatprep.subr.bf16.mxu0 %v1907_v0  ;;  %v1911_v3 = vld [vmem:[%s2521_s0] sm:$0xff]   ;;  %v1912_v5 = vld [vmem:[%s2521_s0 + $0x8] sm:$0xff]   ;;  %v2131_v28 = vld [vmem:[%s2524_s4 + $0x18] sm:$0xff]  }
   0x3   :  { %1724 = vmatpush3.bf16.msra.mxu0 %v1907_v0  ;;  %1731 = vmatprep.mubr.msk.bf16.mxu0 %vm110_vm0, %v1911_v3  ;;  %v1910_v4 = vld [vmem:[%s2520_s1] sm:$0xff]   ;;  %s2021_s1 = smov 64   ;;  %v2107_v22 = vld [vmem:[%s2523_s2 + $0x8] sm:$0xff]   ;;  %v2138_v30 = vld [vmem:[%s2524_s4 + $0x10] sm:$0xff]  }
   0x4   :  { %1725 = vmatprep.subr.bf16.mxu0 %v1908_v1  ;;  %v2095_v7 = vld [vmem:[%s2522_s3] ss:$0 sm:$0xff]  ;;  %1740 = vmatpush3.bf16.msra.mxu1 %v2107_v22  ;;  %v2147_v31 = vld [vmem:[%s2524_s4 + $0x8] sm:$0xff]  }
   0x5   :  { %v2114_v23 = vld [vmem:[%s2523_s2] sm:$0xff]   ;;  %1741 = vmatprep.subr.bf16.mxu1 %v2023_v21 }
   0x6   :  { %v2154_v33 = vld [vmem:[%s2524_s4] sm:$0xff]  }
   0x7   :  { %1726 = vmatpush3.bf16.msra.mxu0 %v1908_v1  ;;  %v2173_v45 = vld [vmem:[%s2525_s5] ss:$0 sm:$0xff] }
   0x8   :  { %1727 = vmatprep.subr.bf16.mxu0 %v1909_v2  ;;  %1742 = vmatpush3.bf16.msra.mxu1 %v2114_v23 }
   0x9   :  { %1747 = vmatprep.subr.bf16.mxu1 %v2023_v21 }
   0xb   :  { %1728 = vmatpush3.bf16.msra.mxu0 %v1909_v2 }
   0xc   :  { %1729 = vmatprep.subr.bf16.mxu0 %v1910_v4 }
   0xf   :  { %1730 = vmatpush3.bf16.msra.mxu0 %v1910_v4 }
  0x10   :  { %1779 = vmatprep.subr.bf16.mxu0 %v2023_v21 }
  0x12   :  { %1732 = vmatmul.mubr.msk.bf16.vlgmr.msra.gmra.mxu0 %vm110_vm0, %v1912_v5 }
  0x13   :  { %1780 = vmatpush3.bf16.msra.mxu0 %v2107_v22 }
  0x14   :  { %1781 = vmatprep.subr.bf16.mxu0 %v2023_v21 }
  0x17   :  { %1782 = vmatpush3.bf16.msra.mxu0 %v2114_v23 }
  0x18   :  { %1787 = vmatprep.subr.bf16.mxu0 %v2023_v21 }
  0xd2   :  { %v2090_v6 = vpop.f32.mrf.mxu0 }
  0xd4   :  { %v157_v8 = vpop.f32.mrf.mxu0 }
  0xd5   :  { %v158_v9 = vadd.f32 %v2095_v7, %v157_v8 }
  0xd6   :  { %v2167_v36 = vpop.f32.mrf.mxu0 }
  0xd7   :  { %v1587_v10 = vmul.f32 -1.442695, %v158_v9 }
  0xd8   :  { %v160_v37 = vpop.f32.mrf.mxu0 }
  0xd9   :  { %1923 = vpow2.f32 %v1587_v10  ;;  %v161_v38 = vadd.f32 %v2095_v7, %v160_v37 }
  0xe6   :  { %v1924_v11 = vpop.eup %1923 }
  0xe7   :  { %v200_v12 = vadd.f32 1.0, %v1924_v11 }
  0xe9   :  { %1925 = vrcp.f32 %v200_v12 }
  0xf6   :  { %v1926_v13 = vpop.eup %1925 }
  0xf7   :  { %v203_v14 = vmul.f32 2.0, %v1926_v13  ;;  %v205_v18 = vmul.f32 0.0, %v1926_v13 }
  0xf9   :  { %v1588_v15 = vadd.f32 -1.0, %v203_v14 }
  0xfb   :  { %207 = vrot.lane.b32.xlu0 %v1588_v15, %s2021_s1 }
 0x16d   :  { %v208_v16 = vpop.permute.xlu0 %207 }
 0x16e   :  { %v210_v17 = vmul.f32 %v1926_v13, %v208_v16 }
 0x170   :  { %212 = vrot.lane.b32.xlu0 %v210_v17, %s2022_s19 }
 0x1e2   :  { %v213_v19 = vpop.permute.xlu0 %212 }
 0x1e3   :  { %v2100_v20 = vadd.f32 %v213_v19, %v205_v18 }
 0x1e5   :  { %1927 = vtanh.f32 %v2100_v20 }
 0x1f2   :  { %v1928_v24 = vpop.eup %1927 }
 0x1f3   :  { %218 = vrot.lane.b32.xlu1 %v1928_v24, %s2021_s1 }
 0x265   :  { %v219_v25 = vpop.permute.xlu1 %218 }
 0x266   :  { %v221_v26 = vmul.f32 %v1926_v13, %v219_v25  ;;  %v166_v25 = vadd.f32 %v2090_v6, %v2095_v7 }
 0x268   :  { %v224_v27 = vpack.c.bf16 %v221_v26, %v221_v26  ;;  %311 = vrot.lane.b32.xlu0 %v221_v26, %s2022_s19 }
 0x26a   :  { %226 = vrot.lane.b32.xlu1 %v224_v27, %s2022_s19 }
 0x2da   :  { %v312_v32 = vpop.permute.xlu0 %311 }
 0x2db   :  { %v314_v34 = vsel %vm240_vm2, %v312_v32, 0.0 }
 0x2dc   :  { %v227_v29 = vpop.permute.xlu1 %226  ;;  %v315_v35 = vpack.c.bf16 %v314_v34, %v314_v34 }
 0x2dd   :  { %1744 = vmatmul.mubr.msk.bf16.vlgmr.msra.gmra.mxu1 %vm240_vm2, %v227_v29 }
 0x2de   :  { %1748 = vmatpush3.bf16.msra.mxu1 %v2131_v28  ;;  %1755 = vmatprep.mubr.msk.bf16.mxu1 %vm2024_vm1, %v2023_v21 }
 0x2df   :  { %1749 = vmatprep.subr.bf16.mxu1 %v2023_v21 }
 0x2e2   :  { %1750 = vmatpush3.bf16.msra.mxu1 %v2138_v30 }
 0x2e3   :  { %1751 = vmatprep.subr.bf16.mxu1 %v2023_v21 }
 0x2e6   :  { %1752 = vmatpush3.bf16.msra.mxu1 %v2147_v31 }
 0x2e7   :  { %1753 = vmatprep.subr.bf16.mxu1 %v2023_v21 }
 0x2ea   :  { %1754 = vmatpush3.bf16.msra.mxu1 %v2154_v33 }
 0x2eb   :  { %1759 = vmatprep.subr.bf16.mxu1 %v2023_v21 }
 0x2ed   :  { %1756 = vmatmul.mubr.msk.bf16.vlgmr.msra.gmra.mxu1 %vm110_vm0, %v315_v35 }
 0x2ee   :  { %1760 = vmatpush3.bf16.msra.mxu1 %v2107_v22  ;;  %1763 = vmatprep.mubr.msk.bf16.mxu1 %vm2024_vm1, %v2023_v21 }
 0x2ef   :  { %1761 = vmatprep.subr.bf16.mxu1 %v2023_v21 }
 0x2f2   :  { %1762 = vmatpush3.bf16.msra.mxu1 %v2114_v23 }
 0x2f3   :  { %1767 = vmatprep.subr.bf16.mxu1 %v2023_v21 }
 0x39d   :  { %v278_v39 = vpop.f32.mrf.mxu1 }
 0x39e   :  { %v284_v40 = vadd.f32 %v278_v39, %v161_v38 }
 0x39f   :  { %v1745_v41 = vpop.f32.mrf.mxu1 }
 0x3a0   :  { %v1592_v42 = vmul.f32 -1.442695, %v284_v40 }
 0x3a1   :  { %v281_v43 = vpop.f32.mrf.mxu1 }
 0x3a2   :  { %1929 = vpow2.f32 %v1592_v42 }
 0x3a3   :  { %v1746_v44 = vpop.f32.mrf.mxu1 }
 0x3ad   :  { %v383_v46 = vpop.f32.mrf.mxu1 }
 0x3ae   :  { %v384_v47 = vadd.f32 %v2173_v45, %v383_v46 }
 0x3af   :  { %v1930_v48 = vpop.eup %1929  ;;  %v1757_v49 = vpop.f32.mrf.mxu1 }
 0x3b0   :  { %v288_v50 = vadd.f32 1.0, %v1930_v48  ;;  %v1600_v51 = vmul.f32 -1.442695, %v384_v47 }
 0x3b1   :  { %v386_v52 = vpop.f32.mrf.mxu1 }
 0x3b2   :  { %1931 = vrcp.f32 %v288_v50 }
 0x3b3   :  { %1933 = vpow2.f32 %v1600_v51  ;;  %v1758_v53 = vpop.f32.mrf.mxu1 }
 0x3bf   :  { %v1932_v54 = vpop.eup %1931 }
 0x3c0   :  { %v1934_v55 = vpop.eup %1933  ;;  %v291_v56 = vmul.f32 2.0, %v1932_v54  ;;  %v293_v2 = vmul.f32 %v1932_v54, %v2100_v20 }
 0x3c1   :  { %v392_v57 = vadd.f32 1.0, %v1934_v55 }
 0x3c2   :  { %v1593_v58 = vadd.f32 -1.0, %v291_v56 }
 0x3c3   :  { %1935 = vrcp.f32 %v392_v57 }
 0x3c4   :  { %295 = vrot.lane.b32.xlu1 %v1593_v58, %s2021_s1 }
 0x3d0   :  { %v1936_v59 = vpop.eup %1935 }
 0x3d1   :  { %v395_v60 = vmul.f32 2.0, %v1936_v59  ;;  %v397_v8 = vmul.f32 0.0, %v1936_v59 }
 0x3d3   :  { %v1601_v61 = vadd.f32 -1.0, %v395_v60 }
 0x3d5   :  { %399 = vrot.lane.b32.xlu0 %v1601_v61, %s2021_s1 }
 0x436   :  { %v296_v62 = vpop.permute.xlu1 %295 }
 0x437   :  { %v298_v63 = vmul.f32 %v1932_v54, %v296_v62 }
 0x439   :  { %300 = vrot.lane.b32.xlu1 %v298_v63, %s2022_s19 }
 0x447   :  { %v400_v0 = vpop.permute.xlu0 %399 }
 0x448   :  { %v402_v1 = vmul.f32 %v1936_v59, %v400_v0  ;;  %v1919_v0 = vld [vmem:[%s2521_s0 + $0x10] sm:$0xff]  }
 0x449   :  { %1735 = vmatprep.mubr.msk.bf16.mxu0 %vm110_vm0, %v1919_v0 }
 0x44a   :  { %404 = vrot.lane.b32.xlu0 %v402_v1, %s2022_s19  ;;  %v1920_v1 = vld [vmem:[%s2521_s0 + $0x18] sm:$0xff]  }
 0x44b   :  { %1736 = vmatmul.mubr.msk.bf16.gmra.mxu0 %vm110_vm0, %v1920_v1 }
 0x44c   :  { %1783 = vmatprep.mubr.msk.bf16.mxu0 %vm2024_vm1, %v2023_v21 }
 0x4ab   :  { %v301_v3 = vpop.permute.xlu1 %300 }
 0x4ac   :  { %v2181_v4 = vadd.f32 %v301_v3, %v293_v2 }
 0x4ae   :  { %1937 = vtanh.f32 %v2181_v4 }
 0x4bb   :  { %v1938_v5 = vpop.eup %1937 }
 0x4bc   :  { %v405_v9 = vpop.permute.xlu0 %404  ;;  %306 = vrot.lane.b32.xlu1 %v1938_v5, %s2021_s1 }
 0x4bd   :  { %v2185_v10 = vadd.f32 %v405_v9, %v397_v8 }
 0x4bf   :  { %1939 = vtanh.f32 %v2185_v10 }
 0x4cc   :  { %v1940_v11 = vpop.eup %1939 }
 0x4cd   :  { %410 = vrot.lane.b32.xlu0 %v1940_v11, %s2021_s1 }
 0x52e   :  { %v307_v12 = vpop.permute.xlu1 %306 }
 0x52f   :  { %v309_v13 = vmul.f32 %v1932_v54, %v307_v12 }
 0x531   :  { %v421_v14 = vpack.c.bf16 %v309_v13, %v309_v13  ;;  %495 = vrot.lane.b32.xlu0 %v309_v13, %s2022_s19 }
 0x533   :  { %423 = vrot.lane.b32.xlu1 %v421_v14, %s2022_s19 }
 0x53f   :  { %v411_v15 = vpop.permute.xlu0 %410 }
 0x540   :  { %v2191_v16 = vmul.f32 %v1936_v59, %v411_v15  ;;  %v2266_v15 = vpop.f32.mrf.mxu0 }
 0x542   :  { %498 = vrot.lane.b32.xlu1 %v2191_v16, %s2021_s1 }
 0x5a3   :  { %v496_v18 = vpop.permute.xlu0 %495 }
 0x5a5   :  { %v424_v17 = vpop.permute.xlu1 %423 }
 0x5a6   :  { %1764 = vmatmul.mubr.msk.bf16.vlgmr.msra.gmra.mxu1 %vm240_vm2, %v424_v17  ;;  %v2268_v17 = vpop.f32.mrf.mxu0 }
 0x5a7   :  { %1768 = vmatpush3.bf16.msra.mxu1 %v2131_v28  ;;  %1775 = vmatprep.mubr.msk.bf16.mxu1 %vm2024_vm1, %v2023_v21 }
 0x5a8   :  { %1769 = vmatprep.subr.bf16.mxu1 %v2023_v21 }
 0x5ab   :  { %1770 = vmatpush3.bf16.msra.mxu1 %v2138_v30 }
 0x5ac   :  { %1771 = vmatprep.subr.bf16.mxu1 %v2023_v21 }
 0x5af   :  { %1772 = vmatpush3.bf16.msra.mxu1 %v2147_v31 }
 0x5b0   :  { %1773 = vmatprep.subr.bf16.mxu1 %v2023_v21 }
 0x5b3   :  { %1774 = vmatpush3.bf16.msra.mxu1 %v2154_v33 }
 0x5b4   :  { %v499_v19 = vpop.permute.xlu1 %498  ;;  %1799 = vmatprep.subr.bf16.mxu1 %v2023_v21 }
 0x5b5   :  { %v501_v20 = vsel %vm240_vm2, %v496_v18, %v499_v19  ;;  %v2270_v18 = vpop.f32.mrf.mxu0 }
 0x5b6   :  { %v502_v24 = vpack.c.bf16 %v501_v20, %v501_v20  ;;  %v169_v20 = vadd.f32 %v2167_v36, %v2095_v7 }
 0x5b7   :  { %v2272_v19 = vpop.f32.mrf.mxu0 }
 0x5b8   :  { %1776 = vmatmul.mubr.msk.bf16.vlgmr.msra.gmra.mxu1 %vm110_vm0, %v502_v24 }
 0x5b9   :  { %1800 = vmatpush3.bf16.msra.mxu1 %v2107_v22  ;;  %1803 = vmatprep.mubr.msk.bf16.mxu1 %vm2024_vm1, %v2023_v21 }
 0x5ba   :  { %1801 = vmatprep.subr.bf16.mxu1 %v2023_v21 }
 0x5bd   :  { %1802 = vmatpush3.bf16.msra.mxu1 %v2114_v23 }
 0x5be   :  { %1807 = vmatprep.subr.bf16.mxu1 %v2023_v21 }
 0x666   :  { %v462_v26 = vpop.f32.mrf.mxu1 }
 0x667   :  { %v468_v27 = vadd.f32 %v462_v26, %v166_v25 }
 0x668   :  { %v1765_v29 = vpop.f32.mrf.mxu1 }
 0x669   :  { %v1603_v32 = vmul.f32 -1.442695, %v468_v27 }
 0x66a   :  { %v465_v34 = vpop.f32.mrf.mxu1 }
 0x66b   :  { %1941 = vpow2.f32 %v1603_v32 }
 0x66c   :  { %v1766_v35 = vpop.f32.mrf.mxu1 }
 0x678   :  { %v1942_v37 = vpop.eup %1941  ;;  %v540_v38 = vpop.f32.mrf.mxu1 }
 0x679   :  { %v472_v39 = vadd.f32 1.0, %v1942_v37  ;;  %v541_v40 = vadd.f32 %v2173_v45, %v540_v38 }
 0x67a   :  { %v1777_v41 = vpop.f32.mrf.mxu1 }
 0x67b   :  { %1943 = vrcp.f32 %v472_v39  ;;  %v1606_v42 = vmul.f32 -1.442695, %v541_v40 }
 0x67c   :  { %v543_v43 = vpop.f32.mrf.mxu1 }
 0x67d   :  { %1945 = vpow2.f32 %v1606_v42 }
 0x67e   :  { %v1778_v44 = vpop.f32.mrf.mxu1 }
 0x688   :  { %v1944_v46 = vpop.eup %1943 }
 0x689   :  { %v475_v6 = vmul.f32 2.0, %v1944_v46  ;;  %v477_v57 = vmul.f32 %v1944_v46, %v2181_v4 }
 0x68a   :  { %v1946_v47 = vpop.eup %1945 }
 0x68b   :  { %v549_v48 = vadd.f32 1.0, %v1946_v47  ;;  %v1604_v49 = vadd.f32 -1.0, %v475_v6 }
 0x68d   :  { %1947 = vrcp.f32 %v549_v48  ;;  %479 = vrot.lane.b32.xlu0 %v1604_v49, %s2021_s1 }
 0x69a   :  { %v1948_v50 = vpop.eup %1947 }
 0x69b   :  { %v552_v51 = vmul.f32 2.0, %v1948_v50  ;;  %v554_v61 = vmul.f32 %v1948_v50, %v2185_v10 }
 0x69d   :  { %v1607_v52 = vadd.f32 -1.0, %v552_v51 }
 0x69f   :  { %556 = vrot.lane.b32.xlu1 %v1607_v52, %s2021_s1 }
 0x6ff   :  { %v480_v53 = vpop.permute.xlu0 %479 }
 0x700   :  { %v482_v54 = vmul.f32 %v1944_v46, %v480_v53 }
 0x702   :  { %484 = vrot.lane.b32.xlu0 %v482_v54, %s2022_s19 }
 0x711   :  { %v557_v55 = vpop.permute.xlu1 %556 }
 0x712   :  { %v559_v56 = vmul.f32 %v1948_v50, %v557_v55 }
 0x714   :  { %561 = vrot.lane.b32.xlu1 %v559_v56, %s2022_s19 }
 0x774   :  { %v485_v58 = vpop.permute.xlu0 %484 }
 0x775   :  { %v2222_v59 = vadd.f32 %v485_v58, %v477_v57 }
 0x777   :  { %1949 = vtanh.f32 %v2222_v59 }
 0x784   :  { %v1950_v60 = vpop.eup %1949 }
 0x785   :  { %490 = vrot.lane.b32.xlu0 %v1950_v60, %s2021_s1 }
 0x786   :  { %v562_v62 = vpop.permute.xlu1 %561 }
 0x787   :  { %v2227_v63 = vadd.f32 %v562_v62, %v554_v61 }
 0x789   :  { %1951 = vtanh.f32 %v2227_v63 }
 0x796   :  { %v1952_v2 = vpop.eup %1951 }
 0x797   :  { %567 = vrot.lane.b32.xlu1 %v1952_v2, %s2021_s1 }
 0x7f7   :  { %v491_v3 = vpop.permute.xlu0 %490 }
 0x7f8   :  { %v493_v4 = vmul.f32 %v1944_v46, %v491_v3 }
 0x7fa   :  { %v579_v5 = vpack.c.bf16 %v493_v4, %v493_v4  ;;  %653 = vrot.lane.b32.xlu1 %v493_v4, %s2022_s19 }
 0x7fc   :  { %581 = vrot.lane.b32.xlu0 %v579_v5, %s2022_s19 }
 0x809   :  { %v568_v8 = vpop.permute.xlu1 %567 }
 0x80a   :  { %v2243_v9 = vmul.f32 %v1948_v50, %v568_v8 }
 0x80c   :  { %656 = vrot.lane.b32.xlu0 %v2243_v9, %s2021_s1 }
 0x86c   :  { %v654_v11 = vpop.permute.xlu1 %653 }
 0x86e   :  { %v582_v10 = vpop.permute.xlu0 %581 }
 0x86f   :  { %1784 = vmatmul.mubr.msk.bf16.vlgmr.msra.gmra.mxu0 %vm240_vm2, %v582_v10 }
 0x870   :  { %1788 = vmatpush3.bf16.msra.mxu0 %v2131_v28  ;;  %1795 = vmatprep.mubr.msk.bf16.mxu0 %vm2024_vm1, %v2023_v21 }
 0x871   :  { %1789 = vmatprep.subr.bf16.mxu0 %v2023_v21 }
 0x874   :  { %1790 = vmatpush3.bf16.msra.mxu0 %v2138_v30 }
 0x875   :  { %1791 = vmatprep.subr.bf16.mxu0 %v2023_v21 }
 0x878   :  { %1792 = vmatpush3.bf16.msra.mxu0 %v2147_v31 }
 0x879   :  { %1793 = vmatprep.subr.bf16.mxu0 %v2023_v21 }
 0x87c   :  { %1794 = vmatpush3.bf16.msra.mxu0 %v2154_v33 }
 0x87d   :  { %1819 = vmatprep.subr.bf16.mxu0 %v2023_v21 }
 0x87e   :  { %v657_v12 = vpop.permute.xlu0 %656 }
 0x87f   :  { %v659_v13 = vsel %vm240_vm2, %v654_v11, %v657_v12  ;;  %v174_v11 = vadd.f32 %v2095_v7, %v2268_v17 }
 0x880   :  { %v660_v14 = vpack.c.bf16 %v659_v13, %v659_v13 }
 0x882   :  { %1796 = vmatmul.mubr.msk.bf16.vlgmr.msra.gmra.mxu0 %vm110_vm0, %v660_v14 }
 0x883   :  { %1820 = vmatpush3.bf16.msra.mxu0 %v2107_v22  ;;  %1823 = vmatprep.mubr.msk.bf16.mxu0 %vm2024_vm1, %v2023_v21 }
 0x884   :  { %1821 = vmatprep.subr.bf16.mxu0 %v2023_v21 }
 0x887   :  { %1822 = vmatpush3.bf16.msra.mxu0 %v2114_v23 }
 0x888   :  { %1827 = vmatprep.subr.bf16.mxu0 %v2023_v21 }
 0x92f   :  { %v620_v24 = vpop.f32.mrf.mxu0 }
 0x930   :  { %v626_v25 = vadd.f32 %v620_v24, %v169_v20 }
 0x931   :  { %v1785_v26 = vpop.f32.mrf.mxu0 }
 0x932   :  { %v1609_v27 = vmul.f32 -1.442695, %v626_v25 }
 0x933   :  { %v623_v29 = vpop.f32.mrf.mxu0 }
 0x934   :  { %1953 = vpow2.f32 %v1609_v27 }
 0x935   :  { %v1786_v32 = vpop.f32.mrf.mxu0 }
 0x941   :  { %v1954_v34 = vpop.eup %1953 }
 0x942   :  { %v630_v35 = vadd.f32 1.0, %v1954_v34  ;;  %v698_v37 = vpop.f32.mrf.mxu0 }
 0x943   :  { %v699_v38 = vadd.f32 %v2173_v45, %v698_v37 }
 0x944   :  { %1955 = vrcp.f32 %v630_v35  ;;  %v1797_v39 = vpop.f32.mrf.mxu0 }
 0x945   :  { %v1612_v40 = vmul.f32 -1.442695, %v699_v38 }
 0x946   :  { %v701_v41 = vpop.f32.mrf.mxu0 }
 0x947   :  { %1957 = vpow2.f32 %v1612_v40 }
 0x948   :  { %v1798_v42 = vpop.f32.mrf.mxu0 }
 0x951   :  { %v1956_v43 = vpop.eup %1955 }
 0x952   :  { %v633_v36 = vmul.f32 2.0, %v1956_v43  ;;  %v635_v54 = vmul.f32 %v1956_v43, %v2222_v59 }
 0x954   :  { %v1958_v44 = vpop.eup %1957  ;;  %v1610_v46 = vadd.f32 -1.0, %v633_v36 }
 0x955   :  { %v707_v6 = vadd.f32 1.0, %v1958_v44 }
 0x956   :  { %637 = vrot.lane.b32.xlu1 %v1610_v46, %s2021_s1 }
 0x957   :  { %1959 = vrcp.f32 %v707_v6 }
 0x964   :  { %v1960_v47 = vpop.eup %1959 }
 0x965   :  { %v710_v48 = vmul.f32 2.0, %v1960_v47  ;;  %v712_v58 = vmul.f32 %v1960_v47, %v2227_v63 }
 0x967   :  { %v1613_v49 = vadd.f32 -1.0, %v710_v48 }
 0x969   :  { %714 = vrot.lane.b32.xlu0 %v1613_v49, %s2021_s1 }
 0x9c8   :  { %v638_v50 = vpop.permute.xlu1 %637 }
 0x9c9   :  { %v640_v51 = vmul.f32 %v1956_v43, %v638_v50 }
 0x9cb   :  { %642 = vrot.lane.b32.xlu1 %v640_v51, %s2022_s19 }
 0x9db   :  { %v715_v52 = vpop.permute.xlu0 %714 }
 0x9dc   :  { %v717_v53 = vmul.f32 %v1960_v47, %v715_v52 }
 0x9de   :  { %719 = vrot.lane.b32.xlu0 %v717_v53, %s2022_s19 }
 0xa3d   :  { %v643_v55 = vpop.permute.xlu1 %642 }
 0xa3e   :  { %v2282_v56 = vadd.f32 %v643_v55, %v635_v54 }
 0xa40   :  { %1961 = vtanh.f32 %v2282_v56 }
 0xa4d   :  { %v1962_v57 = vpop.eup %1961 }
 0xa4e   :  { %648 = vrot.lane.b32.xlu1 %v1962_v57, %s2021_s1 }
 0xa50   :  { %v720_v60 = vpop.permute.xlu0 %719 }
 0xa51   :  { %v2287_v61 = vadd.f32 %v720_v60, %v712_v58 }
 0xa53   :  { %1963 = vtanh.f32 %v2287_v61 }
 0xa60   :  { %v1964_v62 = vpop.eup %1963 }
 0xa61   :  { %725 = vrot.lane.b32.xlu0 %v1964_v62, %s2021_s1 }
 0xac0   :  { %v649_v0 = vpop.permute.xlu1 %648 }
 0xac1   :  { %v651_v59 = vmul.f32 %v1956_v43, %v649_v0 }
 0xac3   :  { %v737_v1 = vpack.c.bf16 %v651_v59, %v651_v59  ;;  %811 = vrot.lane.b32.xlu0 %v651_v59, %s2022_s19 }
 0xac5   :  { %739 = vrot.lane.b32.xlu1 %v737_v1, %s2022_s19 }
 0xad3   :  { %v726_v2 = vpop.permute.xlu0 %725 }
 0xad4   :  { %v2293_v3 = vmul.f32 %v1960_v47, %v726_v2 }
 0xad6   :  { %814 = vrot.lane.b32.xlu1 %v2293_v3, %s2021_s1 }
 0xb35   :  { %v812_v4 = vpop.permute.xlu0 %811 }
 0xb37   :  { %v740_v63 = vpop.permute.xlu1 %739 }
 0xb38   :  { %1804 = vmatmul.mubr.msk.bf16.vlgmr.msra.gmra.mxu1 %vm240_vm2, %v740_v63 }
 0xb39   :  { %1808 = vmatpush3.bf16.msra.mxu1 %v2131_v28  ;;  %1815 = vmatprep.mubr.msk.bf16.mxu1 %vm2024_vm1, %v2023_v21 }
 0xb3a   :  { %1809 = vmatprep.subr.bf16.mxu1 %v2023_v21 }
 0xb3d   :  { %1810 = vmatpush3.bf16.msra.mxu1 %v2138_v30 }
 0xb3e   :  { %1811 = vmatprep.subr.bf16.mxu1 %v2023_v21 }
 0xb41   :  { %1812 = vmatpush3.bf16.msra.mxu1 %v2147_v31 }
 0xb42   :  { %1813 = vmatprep.subr.bf16.mxu1 %v2023_v21 }
 0xb45   :  { %1814 = vmatpush3.bf16.msra.mxu1 %v2154_v33 }
 0xb46   :  { %1839 = vmatprep.subr.bf16.mxu1 %v2023_v21 }
 0xb48   :  { %v815_v5 = vpop.permute.xlu1 %814 }
 0xb49   :  { %v817_v8 = vsel %vm240_vm2, %v812_v4, %v815_v5  ;;  %v177_v4 = vadd.f32 %v2095_v7, %v2272_v19 }
 0xb4a   :  { %v818_v10 = vpack.c.bf16 %v817_v8, %v817_v8 }
 0xb4c   :  { %1816 = vmatmul.mubr.msk.bf16.vlgmr.msra.gmra.mxu1 %vm110_vm0, %v818_v10 }
 0xb4d   :  { %1840 = vmatpush3.bf16.msra.mxu1 %v2107_v22  ;;  %1843 = vmatprep.mubr.msk.bf16.mxu1 %vm2024_vm1, %v2023_v21 }
 0xb4e   :  { %1841 = vmatprep.subr.bf16.mxu1 %v2023_v21 }
 0xb51   :  { %1842 = vmatpush3.bf16.msra.mxu1 %v2114_v23 }
 0xb52   :  { %1847 = vmatprep.subr.bf16.mxu1 %v2023_v21 }
 0xbf8   :  { %v778_v12 = vpop.f32.mrf.mxu1 }
 0xbf9   :  { %v784_v13 = vadd.f32 %v778_v12, %v174_v11 }
 0xbfa   :  { %v1805_v14 = vpop.f32.mrf.mxu1 }
 0xbfb   :  { %v1615_v20 = vmul.f32 -1.442695, %v784_v13 }
 0xbfc   :  { %v781_v24 = vpop.f32.mrf.mxu1 }
 0xbfd   :  { %1965 = vpow2.f32 %v1615_v20 }
 0xbfe   :  { %v1806_v25 = vpop.f32.mrf.mxu1 }
 0xc0a   :  { %v1966_v26 = vpop.eup %1965 }
 0xc0b   :  { %v788_v27 = vadd.f32 1.0, %v1966_v26 }
 0xc0c   :  { %v856_v29 = vpop.f32.mrf.mxu1 }
 0xc0d   :  { %1967 = vrcp.f32 %v788_v27  ;;  %v857_v32 = vadd.f32 %v2173_v45, %v856_v29 }
 0xc0e   :  { %v1817_v34 = vpop.f32.mrf.mxu1 }
 0xc0f   :  { %v1618_v35 = vmul.f32 -1.442695, %v857_v32 }
 0xc10   :  { %v859_v37 = vpop.f32.mrf.mxu1 }
 0xc11   :  { %1969 = vpow2.f32 %v1618_v35 }
 0xc12   :  { %v1818_v38 = vpop.f32.mrf.mxu1 }
 0xc1a   :  { %v1968_v39 = vpop.eup %1967 }
 0xc1b   :  { %v791_v17 = vmul.f32 2.0, %v1968_v39  ;;  %v793_v49 = vmul.f32 %v1968_v39, %v2282_v56 }
 0xc1d   :  { %v1616_v40 = vadd.f32 -1.0, %v791_v17 }
 0xc1e   :  { %v1970_v41 = vpop.eup %1969 }
 0xc1f   :  { %v865_v42 = vadd.f32 1.0, %v1970_v41  ;;  %795 = vrot.lane.b32.xlu0 %v1616_v40, %s2021_s1 }
 0xc21   :  { %1971 = vrcp.f32 %v865_v42 }
 0xc2e   :  { %v1972_v43 = vpop.eup %1971 }
 0xc2f   :  { %v868_v36 = vmul.f32 2.0, %v1972_v43  ;;  %v870_v53 = vmul.f32 %v1972_v43, %v2287_v61 }
 0xc31   :  { %v1619_v44 = vadd.f32 -1.0, %v868_v36 }
 0xc33   :  { %872 = vrot.lane.b32.xlu1 %v1619_v44, %s2021_s1 }
 0xc91   :  { %v796_v46 = vpop.permute.xlu0 %795 }
 0xc92   :  { %v798_v6 = vmul.f32 %v1968_v39, %v796_v46 }
 0xc94   :  { %800 = vrot.lane.b32.xlu0 %v798_v6, %s2022_s19 }
 0xca5   :  { %v873_v47 = vpop.permute.xlu1 %872 }
 0xca6   :  { %v875_v48 = vmul.f32 %v1972_v43, %v873_v47 }
 0xca8   :  { %877 = vrot.lane.b32.xlu1 %v875_v48, %s2022_s19 }
 0xd06   :  { %v801_v50 = vpop.permute.xlu0 %800 }
 0xd07   :  { %v2324_v51 = vadd.f32 %v801_v50, %v793_v49 }
 0xd09   :  { %1973 = vtanh.f32 %v2324_v51 }
 0xd16   :  { %v1974_v52 = vpop.eup %1973 }
 0xd17   :  { %806 = vrot.lane.b32.xlu0 %v1974_v52, %s2021_s1 }
 0xd1a   :  { %v878_v54 = vpop.permute.xlu1 %877 }
 0xd1b   :  { %v2329_v55 = vadd.f32 %v878_v54, %v870_v53 }
 0xd1d   :  { %1975 = vtanh.f32 %v2329_v55 }
 0xd2a   :  { %v1976_v57 = vpop.eup %1975 }
 0xd2b   :  { %883 = vrot.lane.b32.xlu1 %v1976_v57, %s2021_s1 }
 0xd89   :  { %v807_v58 = vpop.permute.xlu0 %806 }
 0xd8a   :  { %v809_v56 = vmul.f32 %v1968_v39, %v807_v58 }
 0xd8c   :  { %v895_v60 = vpack.c.bf16 %v809_v56, %v809_v56  ;;  %969 = vrot.lane.b32.xlu1 %v809_v56, %s2022_s19 }
 0xd8e   :  { %897 = vrot.lane.b32.xlu0 %v895_v60, %s2022_s19 }
 0xd9d   :  { %v884_v62 = vpop.permute.xlu1 %883 }
 0xd9e   :  { %v2335_v0 = vmul.f32 %v1972_v43, %v884_v62  ;;  %v182_v62 = vadd.f32 %v2266_v15, %v2095_v7 }
 0xda0   :  { %972 = vrot.lane.b32.xlu0 %v2335_v0, %s2021_s1 }
 0xdfe   :  { %v970_v59 = vpop.permute.xlu1 %969 }
 0xe00   :  { %v898_v61 = vpop.permute.xlu0 %897 }
 0xe01   :  { %1824 = vmatmul.mubr.msk.bf16.vlgmr.msra.gmra.mxu0 %vm240_vm2, %v898_v61 }
 0xe02   :  { %1828 = vmatpush3.bf16.msra.mxu0 %v2131_v28  ;;  %1835 = vmatprep.mubr.msk.bf16.mxu0 %vm2024_vm1, %v2023_v21 }
 0xe03   :  { %1829 = vmatprep.subr.bf16.mxu0 %v2023_v21 }
 0xe06   :  { %1830 = vmatpush3.bf16.msra.mxu0 %v2138_v30 }
 0xe07   :  { %1831 = vmatprep.subr.bf16.mxu0 %v2023_v21 }
 0xe0a   :  { %1832 = vmatpush3.bf16.msra.mxu0 %v2147_v31 }
 0xe0b   :  { %1833 = vmatprep.subr.bf16.mxu0 %v2023_v21 }
 0xe0e   :  { %1834 = vmatpush3.bf16.msra.mxu0 %v2154_v33 }
 0xe0f   :  { %1859 = vmatprep.subr.bf16.mxu0 %v2023_v21 }
 0xe12   :  { %v973_v1 = vpop.permute.xlu0 %972 }
 0xe13   :  { %v975_v2 = vsel %vm240_vm2, %v970_v59, %v973_v1 }
 0xe14   :  { %v976_v63 = vpack.c.bf16 %v975_v2, %v975_v2 }
 0xe16   :  { %1836 = vmatmul.mubr.msk.bf16.vlgmr.msra.gmra.mxu0 %vm110_vm0, %v976_v63 }
 0xe17   :  { %1860 = vmatpush3.bf16.msra.mxu0 %v2107_v22  ;;  %1863 = vmatprep.mubr.msk.bf16.mxu0 %vm2024_vm1, %v2023_v21 }
 0xe18   :  { %1861 = vmatprep.subr.bf16.mxu0 %v2023_v21 }
 0xe1b   :  { %1862 = vmatpush3.bf16.msra.mxu0 %v2114_v23 }
 0xe1c   :  { %1867 = vmatprep.subr.bf16.mxu0 %v2023_v21 }
 0xec1   :  { %v936_v5 = vpop.f32.mrf.mxu0 }
 0xec2   :  { %v942_v8 = vadd.f32 %v936_v5, %v177_v4 }
 0xec3   :  { %v1825_v10 = vpop.f32.mrf.mxu0 }
 0xec4   :  { %v1621_v11 = vmul.f32 -1.442695, %v942_v8 }
 0xec5   :  { %v939_v12 = vpop.f32.mrf.mxu0 }
 0xec6   :  { %1977 = vpow2.f32 %v1621_v11 }
 0xec7   :  { %v1826_v13 = vpop.f32.mrf.mxu0 }
 0xed3   :  { %v1978_v22 = vpop.eup %1977 }
 0xed4   :  { %v946_v14 = vadd.f32 1.0, %v1978_v22 }
 0xed6   :  { %1979 = vrcp.f32 %v946_v14  ;;  %v1014_v20 = vpop.f32.mrf.mxu0 }
 0xed7   :  { %v1015_v24 = vadd.f32 %v2173_v45, %v1014_v20 }
 0xed8   :  { %v1837_v25 = vpop.f32.mrf.mxu0 }
 0xed9   :  { %v1624_v23 = vmul.f32 -1.442695, %v1015_v24 }
 0xeda   :  { %v1017_v26 = vpop.f32.mrf.mxu0 }
 0xedb   :  { %1981 = vpow2.f32 %v1624_v23 }
 0xedc   :  { %v1838_v27 = vpop.f32.mrf.mxu0 }
 0xee3   :  { %v1980_v29 = vpop.eup %1979 }
 0xee4   :  { %v949_v19 = vmul.f32 2.0, %v1980_v29  ;;  %v951_v43 = vmul.f32 %v1980_v29, %v2324_v51 }
 0xee6   :  { %v1622_v32 = vadd.f32 -1.0, %v949_v19 }
 0xee8   :  { %v1982_v34 = vpop.eup %1981  ;;  %953 = vrot.lane.b32.xlu1 %v1622_v32, %s2021_s1 }
 0xee9   :  { %v1023_v35 = vadd.f32 1.0, %v1982_v34 }
 0xeeb   :  { %1983 = vrcp.f32 %v1023_v35 }
 0xef8   :  { %v1984_v37 = vpop.eup %1983 }
 0xef9   :  { %v1026_v38 = vmul.f32 2.0, %v1984_v37  ;;  %v1028_v6 = vmul.f32 %v1984_v37, %v2329_v55 }
 0xefb   :  { %v1625_v39 = vadd.f32 -1.0, %v1026_v38 }
 0xefd   :  { %1030 = vrot.lane.b32.xlu0 %v1625_v39, %s2021_s1 }
 0xf5a   :  { %v954_v17 = vpop.permute.xlu1 %953 }
 0xf5b   :  { %v956_v40 = vmul.f32 %v1980_v29, %v954_v17 }
 0xf5d   :  { %958 = vrot.lane.b32.xlu1 %v956_v40, %s2022_s19 }
 0xf6f   :  { %v1031_v41 = vpop.permute.xlu0 %1030 }
 0xf70   :  { %v1033_v42 = vmul.f32 %v1984_v37, %v1031_v41 }
 0xf72   :  { %1035 = vrot.lane.b32.xlu0 %v1033_v42, %s2022_s19 }
 0xfcf   :  { %v959_v36 = vpop.permute.xlu1 %958 }
 0xfd0   :  { %v2366_v44 = vadd.f32 %v959_v36, %v951_v43 }
 0xfd2   :  { %1985 = vtanh.f32 %v2366_v44 }
 0xfdf   :  { %v1986_v46 = vpop.eup %1985 }
 0xfe0   :  { %964 = vrot.lane.b32.xlu1 %v1986_v46, %s2021_s1 }
 0xfe4   :  { %v1036_v47 = vpop.permute.xlu0 %1035 }
 0xfe5   :  { %v2371_v48 = vadd.f32 %v1036_v47, %v1028_v6 }
 0xfe7   :  { %1987 = vtanh.f32 %v2371_v48 }
 0xff4   :  { %v1988_v49 = vpop.eup %1987 }
 0xff5   :  { %1041 = vrot.lane.b32.xlu0 %v1988_v49, %s2021_s1 }
0x1052   :  { %v965_v50 = vpop.permute.xlu1 %964 }
0x1053   :  { %v967_v51 = vmul.f32 %v1980_v29, %v965_v50 }
0x1055   :  { %v1053_v52 = vpack.c.bf16 %v967_v51, %v967_v51  ;;  %1127 = vrot.lane.b32.xlu0 %v967_v51, %s2022_s19  ;;  %v2019_v51 = vld [vmem:[%s2522_s3] ss:$0 sm:$0xff] }
0x1057   :  { %1055 = vrot.lane.b32.xlu1 %v1053_v52, %s2022_s19 }
0x1067   :  { %v1042_v53 = vpop.permute.xlu0 %1041 }
0x1068   :  { %v2377_v54 = vmul.f32 %v1984_v37, %v1042_v53 }
0x106a   :  { %1130 = vrot.lane.b32.xlu1 %v2377_v54, %s2021_s1 }
0x10c7   :  { %v1128_v57 = vpop.permute.xlu0 %1127 }
0x10c9   :  { %v1056_v55 = vpop.permute.xlu1 %1055 }
0x10ca   :  { %1844 = vmatmul.mubr.msk.bf16.vlgmr.msra.gmra.mxu1 %vm240_vm2, %v1056_v55 }
0x10cb   :  { %1848 = vmatpush3.bf16.msra.mxu1 %v2131_v28  ;;  %1855 = vmatprep.mubr.msk.bf16.mxu1 %vm2024_vm1, %v2023_v21 }
0x10cc   :  { %1849 = vmatprep.subr.bf16.mxu1 %v2023_v21 }
0x10cf   :  { %1850 = vmatpush3.bf16.msra.mxu1 %v2138_v30 }
0x10d0   :  { %1851 = vmatprep.subr.bf16.mxu1 %v2023_v21 }
0x10d3   :  { %1852 = vmatpush3.bf16.msra.mxu1 %v2147_v31 }
0x10d4   :  { %1853 = vmatprep.subr.bf16.mxu1 %v2023_v21 }
0x10d7   :  { %1854 = vmatpush3.bf16.msra.mxu1 %v2154_v33 }
0x10d8   :  { %1879 = vmatprep.subr.bf16.mxu1 %v2023_v21 }
0x10dc   :  { %v1131_v58 = vpop.permute.xlu1 %1130 }
0x10dd   :  { %v1133_v56 = vsel %vm240_vm2, %v1128_v57, %v1131_v58 }
0x10de   :  { %v1134_v60 = vpack.c.bf16 %v1133_v56, %v1133_v56 }
0x10e0   :  { %1856 = vmatmul.mubr.msk.bf16.vlgmr.msra.gmra.mxu1 %vm110_vm0, %v1134_v60 }
0x10e1   :  { %1880 = vmatpush3.bf16.msra.mxu1 %v2131_v28  ;;  %1887 = vmatprep.mubr.msk.bf16.mxu1 %vm2024_vm1, %v2023_v21 }
0x10e2   :  { %1881 = vmatprep.subr.bf16.mxu1 %v2023_v21 }
0x10e5   :  { %1882 = vmatpush3.bf16.msra.mxu1 %v2138_v30 }
0x10e6   :  { %1883 = vmatprep.subr.bf16.mxu1 %v2023_v21 }
0x10e9   :  { %1884 = vmatpush3.bf16.msra.mxu1 %v2147_v31 }
0x10ea   :  { %1885 = vmatprep.subr.bf16.mxu1 %v2023_v21 }
0x10ed   :  { %1886 = vmatpush3.bf16.msra.mxu1 %v2154_v33 }
0x118a   :  { %v1094_v61 = vpop.f32.mrf.mxu1 }
0x118b   :  { %v1100_v59 = vadd.f32 %v1094_v61, %v182_v62 }
0x118c   :  { %v1845_v1 = vpop.f32.mrf.mxu1 }
0x118d   :  { %v1627_v2 = vmul.f32 -1.442695, %v1100_v59 }
0x118e   :  { %v1097_v63 = vpop.f32.mrf.mxu1 }
0x118f   :  { %1989 = vpow2.f32 %v1627_v2 }
0x1190   :  { %v1846_v4 = vpop.f32.mrf.mxu1 }
0x119c   :  { %v1990_v5 = vpop.eup %1989 }
0x119d   :  { %v1104_v8 = vadd.f32 1.0, %v1990_v5 }
0x119f   :  { %1991 = vrcp.f32 %v1104_v8 }
0x11a0   :  { %v1172_v10 = vpop.f32.mrf.mxu1 }
0x11a1   :  { %v1173_v11 = vadd.f32 %v2173_v45, %v1172_v10 }
0x11a2   :  { %v1857_v12 = vpop.f32.mrf.mxu1 }
0x11a3   :  { %v1630_v13 = vmul.f32 -1.442695, %v1173_v11 }
0x11a4   :  { %v1175_v22 = vpop.f32.mrf.mxu1 }
0x11a5   :  { %1993 = vpow2.f32 %v1630_v13 }
0x11a6   :  { %v1858_v14 = vpop.f32.mrf.mxu1 }
0x11ac   :  { %v1992_v20 = vpop.eup %1991 }
0x11ad   :  { %v1107_v7 = vmul.f32 2.0, %v1992_v20  ;;  %v1109_v35 = vmul.f32 %v1992_v20, %v2366_v44 }
0x11af   :  { %v1628_v15 = vadd.f32 -1.0, %v1107_v7 }
0x11b1   :  { %1111 = vrot.lane.b32.xlu0 %v1628_v15, %s2021_s1 }
0x11b2   :  { %v1994_v24 = vpop.eup %1993 }
0x11b3   :  { %v1181_v25 = vadd.f32 1.0, %v1994_v24 }
0x11b5   :  { %1995 = vrcp.f32 %v1181_v25 }
0x11c2   :  { %v1996_v23 = vpop.eup %1995 }
0x11c3   :  { %v1184_v26 = vmul.f32 2.0, %v1996_v23  ;;  %v1186_v17 = vmul.f32 %v1996_v23, %v2371_v48 }
0x11c5   :  { %v1631_v27 = vadd.f32 -1.0, %v1184_v26 }
0x11c7   :  { %1188 = vrot.lane.b32.xlu1 %v1631_v27, %s2021_s1 }
0x1223   :  { %v1112_v29 = vpop.permute.xlu0 %1111 }
0x1224   :  { %v1114_v19 = vmul.f32 %v1992_v20, %v1112_v29 }
0x1226   :  { %1116 = vrot.lane.b32.xlu0 %v1114_v19, %s2022_s19 }
0x1239   :  { %v1189_v32 = vpop.permute.xlu1 %1188 }
0x123a   :  { %v1191_v34 = vmul.f32 %v1996_v23, %v1189_v32 }
0x123c   :  { %1193 = vrot.lane.b32.xlu1 %v1191_v34, %s2022_s19 }
0x1298   :  { %v1117_v37 = vpop.permute.xlu0 %1116 }
0x1299   :  { %v2411_v38 = vadd.f32 %v1117_v37, %v1109_v35 }
0x129b   :  { %1997 = vtanh.f32 %v2411_v38 }
0x12a8   :  { %v1998_v39 = vpop.eup %1997 }
0x12a9   :  { %1122 = vrot.lane.b32.xlu0 %v1998_v39, %s2021_s1 }
0x12ae   :  { %v1194_v40 = vpop.permute.xlu1 %1193 }
0x12af   :  { %v2416_v41 = vadd.f32 %v1194_v40, %v1186_v17  ;;  %v2020_v17 = vld [vmem:[%s2525_s5] ss:$0 sm:$0xff] }
0x12b1   :  { %1999 = vtanh.f32 %v2416_v41 }
0x12be   :  { %v2000_v42 = vpop.eup %1999 }
0x12bf   :  { %1199 = vrot.lane.b32.xlu1 %v2000_v42, %s2021_s1 }
0x131b   :  { %v1123_v43 = vpop.permute.xlu0 %1122 }
0x131c   :  { %v1125_v36 = vmul.f32 %v1992_v20, %v1123_v43 }
0x131e   :  { %v1211_v44 = vpack.c.bf16 %v1125_v36, %v1125_v36  ;;  %1285 = vrot.lane.b32.xlu1 %v1125_v36, %s2022_s19 }
0x1320   :  { %1213 = vrot.lane.b32.xlu0 %v1211_v44, %s2022_s19 }
0x1331   :  { %v1200_v46 = vpop.permute.xlu1 %1199 }
0x1332   :  { %v2422_v6 = vmul.f32 %v1996_v23, %v1200_v46 }
0x1334   :  { %1288 = vrot.lane.b32.xlu0 %v2422_v6, %s2021_s1 }
0x1390   :  { %v1286_v48 = vpop.permute.xlu1 %1285 }
0x1392   :  { %v1214_v47 = vpop.permute.xlu0 %1213 }
0x1393   :  { %1864 = vmatmul.mubr.msk.bf16.vlgmr.msra.gmra.mxu0 %vm240_vm2, %v1214_v47 }
0x1394   :  { %1868 = vmatpush3.bf16.msra.mxu0 %v2131_v28  ;;  %1875 = vmatprep.mubr.msk.bf16.mxu0 %vm2024_vm1, %v2023_v21 }
0x1395   :  { %1869 = vmatprep.subr.bf16.mxu0 %v2023_v21 }
0x1398   :  { %1870 = vmatpush3.bf16.msra.mxu0 %v2138_v30  ;;  %v185_v30 = vadd.f32 %v2019_v51, %v2270_v18 }
0x1399   :  { %1871 = vmatprep.subr.bf16.mxu0 %v2023_v21 }
0x139c   :  { %1872 = vmatpush3.bf16.msra.mxu0 %v2147_v31 }
0x139d   :  { %1873 = vmatprep.subr.bf16.mxu0 %v2023_v21 }
0x13a0   :  { %1874 = vmatpush3.bf16.msra.mxu0 %v2154_v33 }
0x13a6   :  { %v1289_v49 = vpop.permute.xlu0 %1288 }
0x13a7   :  { %v1291_v50 = vsel %vm240_vm2, %v1286_v48, %v1289_v49 }
0x13a8   :  { %v1292_v28 = vpack.c.bf16 %v1291_v50, %v1291_v50 }
0x13aa   :  { %1876 = vmatmul.mubr.msk.bf16.vlgmr.msra.gmra.mxu0 %vm110_vm0, %v1292_v28 }
0x1453   :  { %v1252_v52 = vpop.f32.mrf.mxu0 }
0x1454   :  { %v1258_v53 = vadd.f32 %v1252_v52, %v185_v30 }
0x1455   :  { %v1865_v31 = vpop.f32.mrf.mxu0 }
0x1456   :  { %v1633_v55 = vmul.f32 -1.442695, %v1258_v53 }
0x1457   :  { %v1255_v21 = vpop.f32.mrf.mxu0 }
0x1458   :  { %2001 = vpow2.f32 %v1633_v55  ;;  %v1922_v21 = vld [vmem:[%s2526_s6] sm:$0xff]  }
0x1459   :  { %v1866_v33 = vpop.f32.mrf.mxu0 }
0x1465   :  { %v2002_v57 = vpop.eup %2001 }
0x1466   :  { %v1262_v58 = vadd.f32 1.0, %v2002_v57 }
0x1468   :  { %2003 = vrcp.f32 %v1262_v58 }
0x146a   :  { %v1330_v56 = vpop.f32.mrf.mxu0 }
0x146b   :  { %v1331_v60 = vadd.f32 %v2173_v45, %v1330_v56 }
0x146c   :  { %v1877_v62 = vpop.f32.mrf.mxu0 }
0x146d   :  { %v1636_v61 = vmul.f32 -1.442695, %v1331_v60 }
0x146e   :  { %v1333_v59 = vpop.f32.mrf.mxu0 }
0x146f   :  { %2005 = vpow2.f32 %v1636_v61 }
0x1470   :  { %v1878_v1 = vpop.f32.mrf.mxu0 }
0x1475   :  { %v2004_v2 = vpop.eup %2003 }
0x1476   :  { %v1265_v18 = vmul.f32 2.0, %v2004_v2  ;;  %v1267_v14 = vmul.f32 %v2004_v2, %v2411_v38 }
0x1478   :  { %v1634_v63 = vadd.f32 -1.0, %v1265_v18 }
0x147a   :  { %1269 = vrot.lane.b32.xlu1 %v1634_v63, %s2021_s1 }
0x147c   :  { %v2006_v4 = vpop.eup %2005 }
0x147d   :  { %v1339_v5 = vadd.f32 1.0, %v2006_v4 }
0x147f   :  { %2007 = vrcp.f32 %v1339_v5 }
0x148c   :  { %v2008_v8 = vpop.eup %2007 }
0x148d   :  { %v1342_v10 = vmul.f32 2.0, %v2008_v8  ;;  %v1344_v24 = vmul.f32 %v2008_v8, %v2416_v41 }
0x148f   :  { %v1637_v11 = vadd.f32 -1.0, %v1342_v10  ;;  %v1641_v10 = vld [vmem:[%s2527_s7] ss:$0 sm:$0xff] }
0x1491   :  { %1346 = vrot.lane.b32.xlu0 %v1637_v11, %s2021_s1 }
0x14ec   :  { %v1270_v12 = vpop.permute.xlu1 %1269 }
0x14ed   :  { %v1272_v45 = vmul.f32 %v2004_v2, %v1270_v12 }
0x14ef   :  { %1274 = vrot.lane.b32.xlu1 %v1272_v45, %s2022_s19 }
0x1503   :  { %v1347_v13 = vpop.permute.xlu0 %1346 }
0x1504   :  { %v1349_v22 = vmul.f32 %v2008_v8, %v1347_v13 }
0x1506   :  { %1351 = vrot.lane.b32.xlu0 %v1349_v22, %s2022_s19 }
0x1561   :  { %v1275_v20 = vpop.permute.xlu1 %1274 }
0x1562   :  { %v1277_v7 = vadd.f32 %v1275_v20, %v1267_v14 }
0x1564   :  { %2009 = vtanh.f32 %v1277_v7 }
0x1571   :  { %v2010_v15 = vpop.eup %2009 }
0x1572   :  { %1280 = vrot.lane.b32.xlu1 %v2010_v15, %s2021_s1 }
0x1578   :  { %v1352_v25 = vpop.permute.xlu0 %1351 }
0x1579   :  { %v1354_v23 = vadd.f32 %v1352_v25, %v1344_v24 }
0x157b   :  { %2011 = vtanh.f32 %v1354_v23 }
0x1588   :  { %v2012_v26 = vpop.eup %2011 }
0x1589   :  { %1357 = vrot.lane.b32.xlu0 %v2012_v26, %s2021_s1 }
0x15e4   :  { %v1281_v27 = vpop.permute.xlu1 %1280 }
0x15e5   :  { %v1283_v29 = vmul.f32 %v2004_v2, %v1281_v27 }
0x15e7   :  { %1368 = vrot.lane.b32.xlu1 %v1283_v29, %s2022_s19 }
0x15fb   :  { %v1358_v19 = vpop.permute.xlu0 %1357 }
0x15fc   :  { %v1360_v32 = vmul.f32 %v2008_v8, %v1358_v19 }
0x15fe   :  { %1371 = vrot.lane.b32.xlu0 %v1360_v32, %s2021_s1 }
0x1659   :  { %v1369_v34 = vpop.permute.xlu1 %1368 }
0x1670   :  { %v1372_v35 = vpop.permute.xlu0 %1371 }
0x1671   :  { %v1374_v37 = vsel %vm240_vm2, %v1369_v34, %v1372_v35 }
0x1672   :  { %v1375_v38 = vpack.c.bf16 %v1374_v37, %v1374_v37 }
0x1674   :  { %1888 = vmatmul.mubr.msk.bf16.vlgmr.msra.gmra.mxu1 %vm110_vm0, %v1375_v38 }
0x1734   :  { %v1413_v39 = vpop.f32.mrf.mxu1 }
0x1735   :  { %v1414_v40 = vadd.f32 %v2020_v17, %v1413_v39 }
0x1736   :  { %v1889_v41 = vpop.f32.mrf.mxu1 }
0x1737   :  { %v1639_v42 = vmul.f32 -1.442695, %v1414_v40 }
0x1738   :  { %v1416_v43 = vpop.f32.mrf.mxu1 }
0x1739   :  { %2013 = vpow2.f32 %v1639_v42 }
0x173a   :  { %v1890_v36 = vpop.f32.mrf.mxu1 }
0x1746   :  { %v2014_v44 = vpop.eup %2013 }
0x1747   :  { %v1422_v46 = vadd.f32 1.0, %v2014_v44 }
0x1749   :  { %2015 = vrcp.f32 %v1422_v46 }
0x1756   :  { %v2016_v47 = vpop.eup %2015 }
0x1757   :  { %v1425_v48 = vmul.f32 2.0, %v2016_v47  ;;  %v1427_v51 = vmul.f32 %v2016_v47, %v1354_v23 }
0x1759   :  { %v1640_v49 = vadd.f32 -1.0, %v1425_v48 }
0x175b   :  { %1429 = vrot.lane.b32.xlu1 %v1640_v49, %s2021_s1 }
0x17cd   :  { %v1430_v50 = vpop.permute.xlu1 %1429 }
0x17ce   :  { %v1432_v28 = vmul.f32 %v2016_v47, %v1430_v50 }
0x17d0   :  { %1434 = vrot.lane.b32.xlu0 %v1432_v28, %s2022_s19 }
0x17d4   :  { %415 = vrot.lane.b32.xlu0 %v2191_v16, %s2022_s19  ;;  %v1921_v16 = vld [vmem:[%s2526_s6 + $0x8] sm:$0xff]  }
0x17d5   :  { %1891 = vmatprep.subr.bf16.mxu0 %v1921_v16 }
0x17d6   :  { %1892 = vmatpush3.bf16.msra.mxu0 %v1921_v16 }
0x17d7   :  { %1893 = vmatprep.subr.bf16.mxu0 %v1922_v21 }
0x17d8   :  { %730 = vrot.lane.b32.xlu0 %v2293_v3, %s2022_s19 }
0x17da   :  { %1894 = vmatpush3.bf16.msra.mxu0 %v1922_v21 }
0x17dc   :  { %1046 = vrot.lane.b32.xlu0 %v2377_v54, %s2022_s19 }
0x17e0   :  { %1362 = vrot.lane.b32.xlu0 %v1360_v32, %s2022_s19 }
0x1842   :  { %v1435_v30 = vpop.permute.xlu0 %1434 }
0x1843   :  { %v1437_v52 = vadd.f32 %v1435_v30, %v1427_v51 }
0x1845   :  { %2017 = vtanh.f32 %v1437_v52 }
0x1846   :  { %v416_v53 = vpop.permute.xlu0 %415 }
0x1847   :  { %418 = vst.msk [vmem:[#allocation3] sm:$0xff] %vm240_vm2, %v416_v53 }
0x184a   :  { %v731_v31 = vpop.permute.xlu0 %730 }
0x184b   :  { %734 = vst.msk [vmem:[#allocation3 + $0x10] sm:$0xff] %vm240_vm2, %v731_v31 }
0x184e   :  { %v1047_v55 = vpop.permute.xlu0 %1046  ;;  %v1450_v62 = vld [vmem:[#allocation3] sm:$0xff] }
0x184f   :  { %1050 = vst.msk [vmem:[#allocation3 + $0x20] sm:$0xff] %vm240_vm2, %v1047_v55 }
0x1852   :  { %v2018_v3 = vpop.eup %2017  ;;  %v1363_v54 = vpop.permute.xlu0 %1362 }
0x1853   :  { %1366 = vst.msk [vmem:[#allocation3 + $0x30] sm:$0xff] %vm240_vm2, %v1363_v54  ;;  %1440 = vrot.lane.b32.xlu1 %v2018_v3, %s2021_s1 }
0x1856   :  { %v1454_v1 = vld [vmem:[#allocation3 + $0x20] sm:$0xff] }
0x1857   :  { %572 = vrot.lane.b32.xlu1 %v2243_v9, %s2022_s19 }
0x185a   :  { %v1456_v4 = vld [vmem:[#allocation3 + $0x30] sm:$0xff] }
0x185b   :  { %888 = vrot.lane.b32.xlu1 %v2335_v0, %s2022_s19  ;;  %v1452_v0 = vld [vmem:[#allocation3 + $0x10] sm:$0xff] }
0x185f   :  { %1204 = vrot.lane.b32.xlu1 %v2422_v6, %s2022_s19 }
0x18c5   :  { %v1441_v33 = vpop.permute.xlu1 %1440 }
0x18c6   :  { %v1443_v57 = vmul.f32 %v2016_v47, %v1441_v33 }
0x18c8   :  { %1445 = vrot.lane.b32.xlu1 %v1443_v57, %s2022_s19 }
0x18c9   :  { %v573_v58 = vpop.permute.xlu1 %572 }
0x18ca   :  { %576 = vst.msk [vmem:[#allocation3 + $0x8] sm:$0xff] %vm240_vm2, %v573_v58 }
0x18cd   :  { %v889_v56 = vpop.permute.xlu1 %888 }
0x18ce   :  { %892 = vst.msk [vmem:[#allocation3 + $0x18] sm:$0xff] %vm240_vm2, %v889_v56 }
0x18d1   :  { %v1205_v60 = vpop.permute.xlu1 %1204  ;;  %v1451_v61 = vld [vmem:[#allocation3 + $0x8] sm:$0xff] }
0x18d2   :  { %1208 = vst.msk [vmem:[#allocation3 + $0x28] sm:$0xff] %vm240_vm2, %v1205_v60  ;;  %v1458_v9 = vpack.c.bf16 %v1451_v61, %v1450_v62 }
0x18d4   :  { %1895 = vmatprep.mubr.msk.bf16.mxu0 %vm240_vm2, %v1458_v9 }
0x18d5   :  { %v1453_v6 = vld [vmem:[#allocation3 + $0x18] sm:$0xff] }
0x18d6   :  { %v1459_v59 = vpack.c.bf16 %v1453_v6, %v1452_v0 }
0x18d8   :  { %1896 = vmatmul.mubr.msk.bf16.vlgmr.msra.gmra.mxu0 %vm240_vm2, %v1459_v59 }
0x18d9   :  { %v1455_v2 = vld [vmem:[#allocation3 + $0x28] sm:$0xff] }
0x18da   :  { %v1460_v18 = vpack.c.bf16 %v1455_v2, %v1454_v1 }
0x18dc   :  { %1899 = vmatprep.mubr.msk.bf16.mxu0 %vm240_vm2, %v1460_v18 }
0x193a   :  { %v1446_v63 = vpop.permute.xlu1 %1445 }
0x193b   :  { %1449 = vst.msk [vmem:[#allocation3 + $0x38] sm:$0xff] %vm240_vm2, %v1446_v63 }
0x1942   :  { %v1457_v5 = vld [vmem:[#allocation3 + $0x38] sm:$0xff] }
0x1943   :  { %v1461_v8 = vpack.c.bf16 %v1457_v5, %v1456_v4 }
0x1945   :  { %1900 = vmatmul.mubr.msk.bf16.gmra.mxu0 %vm240_vm2, %v1461_v8 }
0x1998   :  { %v1897_v11 = vpop.f32.mrf.mxu0 }
0x1999   :  { %v1540_v12 = vadd.f32 %v1897_v11, %v1641_v10 }
0x199a   :  { %v1531_v45 = vpop.f32.mrf.mxu0 }
0x199b   :  { %1564 = vst [vmem:[%s2528_s8 + $0x10] sm:$0xff] %v1540_v12  ;;  %v1532_v13 = vadd.f32 %v1641_v10, %v1531_v45 }
0x199c   :  { %v1898_v22 = vpop.f32.mrf.mxu0 }
0x199d   :  { %1562 = vst [vmem:[%s2528_s8] sm:$0xff] %v1532_v13  ;;  %v1543_v14 = vadd.f32 %v1898_v22, %v1641_v10 }
0x199e   :  { %v1534_v20 = vpop.f32.mrf.mxu0 }
0x199f   :  { %1565 = vst [vmem:[%s2528_s8 + $0x18] sm:$0xff] %v1543_v14  ;;  %v1535_v7 = vadd.f32 %v1641_v10, %v1534_v20 }
0x19a1   :  { %1563 = vst [vmem:[%s2528_s8 + $0x8] sm:$0xff] %v1535_v7 }
0x1a05   :  { %v1901_v15 = vpop.f32.mrf.mxu0 }
0x1a06   :  { %v1556_v24 = vadd.f32 %v1901_v15, %v1641_v10 }
0x1a07   :  { %v1547_v25 = vpop.f32.mrf.mxu0 }
0x1a08   :  { %1568 = vst [vmem:[%s2528_s8 + $0x30] sm:$0xff] %v1556_v24  ;;  %v1548_v23 = vadd.f32 %v1641_v10, %v1547_v25 }
0x1a09   :  { %v1902_v26 = vpop.f32.mrf.mxu0 }
0x1a0a   :  { %1566 = vst [vmem:[%s2528_s8 + $0x20] sm:$0xff] %v1548_v23  ;;  %v1559_v27 = vadd.f32 %v1902_v26, %v1641_v10 }
0x1a0b   :  { %v1550_v29 = vpop.f32.mrf.mxu0 }
0x1a0c   :  { %1569 = vst [vmem:[%s2528_s8 + $0x38] sm:$0xff] %v1559_v27  ;;  %v1551_v19 = vadd.f32 %v1641_v10, %v1550_v29 }
0x1a0e   :  { %1567 = vst [vmem:[%s2528_s8 + $0x28] sm:$0xff] %v1551_v19 }

</bundles_post_ra>
